<compile_context>
chip_gen: v6e
topology: v6e:2x2x1
jax: 0.10.0
libtpu: 0.0.40
codegen_flags: <defaults>
</compile_context>

<pallas_src>
import jax
import jax.numpy as jnp
import numpy as np
from jax.experimental import pallas as pl
from jax.experimental.pallas import tpu as pltpu

IN_DIM = 2          # input_dim
HID = 8             # hidden_dim
N_ITERS = 3         # n_iters
D = IN_DIM + HID    # latent feature dim carried between iterations (10)


def _round_up(x, m):
    return ((x + m - 1) // m) * m


def segment_classifier_kernel(
    x_ref, ri_ref, ro_ref, rit_ref, rot_ref,
    w_in_t_ref, b_in_ref,
    we1_boh_ref, we1_box_ref, we1_bih_ref, we1_bix_ref, be1_ref,
    we2_t_ref, be2_ref,
    wn1_mih_ref, wn1_mix_ref, wn1_moh_ref, wn1_mox_ref,
    wn1_hh_ref, wn1_hx_ref, bn1_ref,
    wn2_t_ref, bn2_ref,
    out_ref,
):
    f32 = jnp.float32
    bf16 = jnp.bfloat16

    # Small (pre-transposed / pre-split) weights, loaded once per grid step.
    w_in_t = w_in_t_ref[...]      # (HID, IN_DIM)
    b_in_c = b_in_ref[...]        # (HID, 1)
    we1_boh = we1_boh_ref[...]    # (HID, HID)
    we1_box = we1_box_ref[...]    # (HID, IN_DIM)
    we1_bih = we1_bih_ref[...]    # (HID, HID)
    we1_bix = we1_bix_ref[...]    # (HID, IN_DIM)
    be1_c = be1_ref[...]          # (HID, 1)
    we2_t = we2_t_ref[...]        # (1, HID)
    be2_c = be2_ref[...]          # (1, 1)
    wn1_mih = wn1_mih_ref[...]    # (HID, HID)
    wn1_mix = wn1_mix_ref[...]    # (HID, IN_DIM)
    wn1_moh = wn1_moh_ref[...]    # (HID, HID)
    wn1_mox = wn1_mox_ref[...]    # (HID, IN_DIM)
    wn1_hh = wn1_hh_ref[...]      # (HID, HID)
    wn1_hx = wn1_hx_ref[...]      # (HID, IN_DIM)
    bn1_c = bn1_ref[...]          # (HID, 1)
    wn2_t = wn2_t_ref[...]        # (HID, HID)
    bn2_c = bn2_ref[...]          # (HID, 1)

    block_b = x_ref.shape[0]
    n_pad = x_ref.shape[2]        # padded N (multiple of 8)
    e_pad = ri_ref.shape[2]       # padded E (multiple of 128)

    for g in range(block_b):
        X_fm = x_ref[g]           # (IN_DIM, Np) f32, feature-major
        Ri = ri_ref[g]            # (Np, Ep)  bf16
        Ro = ro_ref[g]            # (Np, Ep)  bf16
        RiT = rit_ref[g]          # (Ep, Np)  bf16
        RoT = rot_ref[g]          # (Ep, Np)  bf16
        X_bf = X_fm.astype(bf16)

        # ---- input network: H = tanh(W_in @ X + b) ---------------------- (HID, Np)
        H = jnp.tanh(jnp.dot(w_in_t, X_fm, preferred_element_type=f32) + b_in_c)

        # ---- loop-invariant X contributions (hoisted) --------------------
        boX = jnp.dot(X_bf, Ro, preferred_element_type=f32)   # (IN_DIM, Ep)
        biX = jnp.dot(X_bf, Ri, preferred_element_type=f32)   # (IN_DIM, Ep)

        edge_const = (jnp.dot(we1_box, boX, preferred_element_type=f32)
                      + jnp.dot(we1_bix, biX, preferred_element_type=f32)
                      + be1_c)                                 # (HID, Ep)
        pi_const = jnp.dot(wn1_mix, boX, preferred_element_type=f32)   # (HID, Ep)
        po_const = jnp.dot(wn1_mox, biX, preferred_element_type=f32)   # (HID, Ep)
        node_const = (jnp.dot(wn1_hx, X_fm, preferred_element_type=f32)
                      + bn1_c)                                 # (HID, Np)
        # pre-broadcast biases once (JAX does not CSE broadcast_in_dim)
        be2_full = jnp.zeros((1, e_pad), f32) + be2_c          # (1, Ep)
        bn2_full = jnp.zeros((HID, n_pad), f32) + bn2_c        # (HID, Np)

        def edge_prob(boH, biH):
            # EdgeNetwork with concat replaced by split-weight partial matmuls.
            z1 = (jnp.dot(we1_boh, boH, preferred_element_type=f32)
                  + jnp.dot(we1_bih, biH, preferred_element_type=f32)
                  + edge_const)                                # (HID, Ep)
            h1 = jnp.tanh(z1)
            logit = jnp.dot(we2_t, h1, preferred_element_type=f32) + be2_full
            return jax.nn.sigmoid(logit)                       # (1, Ep)

        for _ in range(N_ITERS):
            H_bf = H.astype(bf16)
            # bo / bi computed once and shared by edge + node networks.
            boH = jnp.dot(H_bf, Ro, preferred_element_type=f32)   # (HID, Ep)
            biH = jnp.dot(H_bf, Ri, preferred_element_type=f32)   # (HID, Ep)

            e = edge_prob(boH, biH)                                # (1, Ep)

            # NodeNetwork, reassociated: Wn1_mi^T @ ((bo*e) @ RiT)
            #   == ((Wn1_mi^T @ bo) * e) @ RiT, with the X part hoisted.
            pi = jnp.dot(wn1_mih, boH, preferred_element_type=f32) + pi_const
            po = jnp.dot(wn1_moh, biH, preferred_element_type=f32) + po_const
            z = (jnp.dot((pi * e).astype(bf16), RiT, preferred_element_type=f32)
                 + jnp.dot((po * e).astype(bf16), RoT, preferred_element_type=f32)
                 + jnp.dot(wn1_hh, H, preferred_element_type=f32)
                 + node_const)                                     # (HID, Np)
            h1n = jnp.tanh(z)
            H = jnp.tanh(jnp.dot(wn2_t, h1n, preferred_element_type=f32) + bn2_full)

        # ---- final edge network ------------------------------------------
        H_bf = H.astype(bf16)
        boH = jnp.dot(H_bf, Ro, preferred_element_type=f32)
        biH = jnp.dot(H_bf, Ri, preferred_element_type=f32)
        e_final = edge_prob(boH, biH)                              # (1, Ep)
        out_ref[g] = e_final


def _prep_weights(params):
    """Pre-transpose / pre-split all Linear weights (done once, outside kernel)."""
    (W_in, b_in, We1, be1, We2, be2, Wn1, bn1, Wn2, bn2) = params
    return (
        W_in.T, b_in.T,                                    # input net
        We1[0:HID].T, We1[HID:D].T,                        # We1: bo-Hn, bo-X
        We1[D:D + HID].T, We1[D + HID:2 * D].T,            # We1: bi-Hn, bi-X
        be1.T,
        We2.T, be2,                                        # (1,HID), (1,1)
        Wn1[0:HID].T, Wn1[HID:D].T,                        # Wn1: mi-Hn, mi-X
        Wn1[D:D + HID].T, Wn1[D + HID:2 * D].T,            # Wn1: mo-Hn, mo-X
        Wn1[2 * D:2 * D + HID].T, Wn1[2 * D + HID:3 * D].T,  # Wn1: H-Hn, H-X
        bn1.T,
        Wn2.T, bn2.T,
    )


def segment_classifier(X, Ri, Ro, params, block_b=1):
    """Wrapper: grid over batch; block_b graphs per grid step."""
    B, N, _ = X.shape
    E = Ri.shape[-1]
    assert B % block_b == 0

    n_pad = _round_up(N, 8)
    e_pad = _round_up(E, 128)   # lane-dense tiles and stores

    # Pad (zeros are inert: padded nodes/edges never touch real outputs).
    X_p = jnp.pad(X, ((0, 0), (0, n_pad - N), (0, 0))).astype(jnp.float32)
    Ri_p = jnp.pad(Ri, ((0, 0), (0, n_pad - N), (0, e_pad - E)))
    Ro_p = jnp.pad(Ro, ((0, 0), (0, n_pad - N), (0, e_pad - E)))

    # Feature-major X, bf16 incidence matrices in both orientations
    # (transposes done once here, never inside the kernel).
    X_t = jnp.swapaxes(X_p, 1, 2)                       # (B, IN_DIM, Np) f32
    Ri_b = Ri_p.astype(jnp.bfloat16)                    # (B, Np, Ep)
    Ro_b = Ro_p.astype(jnp.bfloat16)
    RiT = jnp.swapaxes(Ri_b, 1, 2)                      # (B, Ep, Np)
    RoT = jnp.swapaxes(Ro_b, 1, 2)

    weights = _prep_weights(params)

    in_specs = [
        pl.BlockSpec((block_b, IN_DIM, n_pad), lambda b: (b, 0, 0)),  # X_t
        pl.BlockSpec((block_b, n_pad, e_pad), lambda b: (b, 0, 0)),   # Ri
        pl.BlockSpec((block_b, n_pad, e_pad), lambda b: (b, 0, 0)),   # Ro
        pl.BlockSpec((block_b, e_pad, n_pad), lambda b: (b, 0, 0)),   # RiT
        pl.BlockSpec((block_b, e_pad, n_pad), lambda b: (b, 0, 0)),   # RoT
    ] + [pl.BlockSpec(w.shape, lambda b: (0, 0)) for w in weights]    # all weights 2D

    out_specs = pl.BlockSpec((block_b, 1, e_pad), lambda b: (b, 0, 0))

    out = pl.pallas_call(
        segment_classifier_kernel,
        out_shape=jax.ShapeDtypeStruct((B, 1, e_pad), jnp.float32),
        grid_spec=pltpu.PrefetchScalarGridSpec(
            num_scalar_prefetch=0,
            grid=(B // block_b,),
            in_specs=in_specs,
            out_specs=out_specs,
        ),
        compiler_params=pltpu.CompilerParams(
            dimension_semantics=("parallel",)),
    )(X_t, Ri_b, Ro_b, RiT, RoT, *weights)

    return out[:, 0, :E]


def segment_classifier_ref(X, Ri, Ro, params):
    """Pure-JAX reference (mirrors the PyTorch module) for validation."""
    (W_in, b_in, We1, be1, We2, be2, Wn1, bn1, Wn2, bn2) = params

    def edge(H):
        bo = jnp.einsum('bne,bnd->bed', Ro, H)
        bi = jnp.einsum('bne,bnd->bed', Ri, H)
        Bc = jnp.concatenate([bo, bi], axis=-1)
        h1 = jnp.tanh(Bc @ We1 + be1)
        return jax.nn.sigmoid(h1 @ We2 + be2)[..., 0]

    H = jnp.tanh(X @ W_in + b_in)
    H = jnp.concatenate([H, X], axis=-1)
    for _ in range(N_ITERS):
        e = edge(H)
        bo = jnp.einsum('bne,bnd->bed', Ro, H)
        bi = jnp.einsum('bne,bnd->bed', Ri, H)
        Rwo = Ro * e[:, None, :]
        Rwi = Ri * e[:, None, :]
        mi = jnp.einsum('bne,bed->bnd', Rwi, bo)
        mo = jnp.einsum('bne,bed->bnd', Rwo, bi)
        M = jnp.concatenate([mi, mo, H], axis=-1)
        Hn = jnp.tanh(jnp.tanh(M @ Wn1 + bn1) @ Wn2 + bn2)
        H = jnp.concatenate([Hn, X], axis=-1)
    return edge(H)


def make_params(key):
    ks = jax.random.split(key, 10)
    scale = 0.2
    W_in = scale * jax.random.normal(ks[0], (IN_DIM, HID), jnp.float32)
    b_in = scale * jax.random.normal(ks[1], (1, HID), jnp.float32)
    We1 = scale * jax.random.normal(ks[2], (2 * D, HID), jnp.float32)
    be1 = scale * jax.random.normal(ks[3], (1, HID), jnp.float32)
    We2 = scale * jax.random.normal(ks[4], (HID, 1), jnp.float32)
    be2 = scale * jax.random.normal(ks[5], (1, 1), jnp.float32)
    Wn1 = scale * jax.random.normal(ks[6], (3 * D, HID), jnp.float32)
    bn1 = scale * jax.random.normal(ks[7], (1, HID), jnp.float32)
    Wn2 = scale * jax.random.normal(ks[8], (HID, HID), jnp.float32)
    bn2 = scale * jax.random.normal(ks[9], (1, HID), jnp.float32)
    return (W_in, b_in, We1, be1, We2, be2, Wn1, bn1, Wn2, bn2)


if __name__ == "__main__":
    B, N, E = 2, 16, 32
    key = jax.random.PRNGKey(0)
    kx, kri, kro, kp = jax.random.split(key, 4)

    X = jax.random.normal(kx, (B, N, IN_DIM), jnp.float32)
    # Random 0/1 incidence matrices (nodes x edges), like a sparse graph.
    Ri = (jax.random.uniform(kri, (B, N, E)) < 0.15).astype(jnp.float32)
    Ro = (jax.random.uniform(kro, (B, N, E)) < 0.15).astype(jnp.float32)

    params = make_params(kp)

    out = segment_classifier(X, Ri, Ro, params, block_b=1)
    out = jax.block_until_ready(out)

    ref = jax.block_until_ready(segment_classifier_ref(X, Ri, Ro, params))
    # bf16 MXU inputs (H, Ri, Ro) -> small drift vs the pure-f32 reference.
    np.testing.assert_allclose(np.asarray(out), np.asarray(ref),
                               rtol=2e-2, atol=2e-2)

    print("KERNEL_OK")
</pallas_src>

<mosaic_0001>
module attributes {stable_mosaic.version = 11 : i64} {
  func.func @segment_classifier_kernel(%arg0: i32, %arg1: memref<1x2x16xf32, #tpu.memory_space<vmem>>, %arg2: memref<1x16x128xbf16, #tpu.memory_space<vmem>>, %arg3: memref<1x16x128xbf16, #tpu.memory_space<vmem>>, %arg4: memref<1x128x16xbf16, #tpu.memory_space<vmem>>, %arg5: memref<1x128x16xbf16, #tpu.memory_space<vmem>>, %arg6: memref<8x2xf32, #tpu.memory_space<vmem>>, %arg7: memref<8x1xf32, #tpu.memory_space<vmem>>, %arg8: memref<8x8xf32, #tpu.memory_space<vmem>>, %arg9: memref<8x2xf32, #tpu.memory_space<vmem>>, %arg10: memref<8x8xf32, #tpu.memory_space<vmem>>, %arg11: memref<8x2xf32, #tpu.memory_space<vmem>>, %arg12: memref<8x1xf32, #tpu.memory_space<vmem>>, %arg13: memref<1x8xf32, #tpu.memory_space<vmem>>, %arg14: memref<1x1xf32, #tpu.memory_space<vmem>>, %arg15: memref<8x8xf32, #tpu.memory_space<vmem>>, %arg16: memref<8x2xf32, #tpu.memory_space<vmem>>, %arg17: memref<8x8xf32, #tpu.memory_space<vmem>>, %arg18: memref<8x2xf32, #tpu.memory_space<vmem>>, %arg19: memref<8x8xf32, #tpu.memory_space<vmem>>, %arg20: memref<8x2xf32, #tpu.memory_space<vmem>>, %arg21: memref<8x1xf32, #tpu.memory_space<vmem>>, %arg22: memref<8x8xf32, #tpu.memory_space<vmem>>, %arg23: memref<8x1xf32, #tpu.memory_space<vmem>>, %arg24: memref<1x1x128xf32, #tpu.memory_space<vmem>>) attributes {dimension_semantics = [#tpu.dimension_semantics<parallel>], iteration_bounds = array<i64: 2>, scalar_prefetch = 0 : i64, scratch_operands = 0 : i64, tpu.core_type = #tpu.core_type<tc>, window_params = [{transform_indices = @transform_0, window_bounds = array<i64: 1, 2, 16>}, {transform_indices = @transform_1, window_bounds = array<i64: 1, 16, 128>}, {transform_indices = @transform_2, window_bounds = array<i64: 1, 16, 128>}, {transform_indices = @transform_3, window_bounds = array<i64: 1, 128, 16>}, {transform_indices = @transform_4, window_bounds = array<i64: 1, 128, 16>}, {pipeline_mode = #tpu.pipeline_mode<synchronous>, transform_indices = @transform_5, window_bounds = array<i64: 8, 2>}, {pipeline_mode = #tpu.pipeline_mode<synchronous>, transform_indices = @transform_6, window_bounds = array<i64: 8, 1>}, {pipeline_mode = #tpu.pipeline_mode<synchronous>, transform_indices = @transform_7, window_bounds = array<i64: 8, 8>}, {pipeline_mode = #tpu.pipeline_mode<synchronous>, transform_indices = @transform_8, window_bounds = array<i64: 8, 2>}, {pipeline_mode = #tpu.pipeline_mode<synchronous>, transform_indices = @transform_9, window_bounds = array<i64: 8, 8>}, {pipeline_mode = #tpu.pipeline_mode<synchronous>, transform_indices = @transform_10, window_bounds = array<i64: 8, 2>}, {pipeline_mode = #tpu.pipeline_mode<synchronous>, transform_indices = @transform_11, window_bounds = array<i64: 8, 1>}, {pipeline_mode = #tpu.pipeline_mode<synchronous>, transform_indices = @transform_12, window_bounds = array<i64: 1, 8>}, {pipeline_mode = #tpu.pipeline_mode<synchronous>, transform_indices = @transform_13, window_bounds = array<i64: 1, 1>}, {pipeline_mode = #tpu.pipeline_mode<synchronous>, transform_indices = @transform_14, window_bounds = array<i64: 8, 8>}, {pipeline_mode = #tpu.pipeline_mode<synchronous>, transform_indices = @transform_15, window_bounds = array<i64: 8, 2>}, {pipeline_mode = #tpu.pipeline_mode<synchronous>, transform_indices = @transform_16, window_bounds = array<i64: 8, 8>}, {pipeline_mode = #tpu.pipeline_mode<synchronous>, transform_indices = @transform_17, window_bounds = array<i64: 8, 2>}, {pipeline_mode = #tpu.pipeline_mode<synchronous>, transform_indices = @transform_18, window_bounds = array<i64: 8, 8>}, {pipeline_mode = #tpu.pipeline_mode<synchronous>, transform_indices = @transform_19, window_bounds = array<i64: 8, 2>}, {pipeline_mode = #tpu.pipeline_mode<synchronous>, transform_indices = @transform_20, window_bounds = array<i64: 8, 1>}, {pipeline_mode = #tpu.pipeline_mode<synchronous>, transform_indices = @transform_21, window_bounds = array<i64: 8, 8>}, {pipeline_mode = #tpu.pipeline_mode<synchronous>, transform_indices = @transform_22, window_bounds = array<i64: 8, 1>}, {transform_indices = @transform_23, window_bounds = array<i64: 1, 1, 128>}]} {
    %c0 = arith.constant 0 : index
    %c0_0 = arith.constant 0 : index
    %0 = vector.load %arg6[%c0, %c0_0] : memref<8x2xf32, #tpu.memory_space<vmem>>, vector<8x2xf32>
    %c0_1 = arith.constant 0 : index
    %c0_2 = arith.constant 0 : index
    %1 = vector.load %arg7[%c0_1, %c0_2] : memref<8x1xf32, #tpu.memory_space<vmem>>, vector<8x1xf32>
    %c0_3 = arith.constant 0 : index
    %c0_4 = arith.constant 0 : index
    %2 = vector.load %arg8[%c0_3, %c0_4] : memref<8x8xf32, #tpu.memory_space<vmem>>, vector<8x8xf32>
    %c0_5 = arith.constant 0 : index
    %c0_6 = arith.constant 0 : index
    %3 = vector.load %arg9[%c0_5, %c0_6] : memref<8x2xf32, #tpu.memory_space<vmem>>, vector<8x2xf32>
    %c0_7 = arith.constant 0 : index
    %c0_8 = arith.constant 0 : index
    %4 = vector.load %arg10[%c0_7, %c0_8] : memref<8x8xf32, #tpu.memory_space<vmem>>, vector<8x8xf32>
    %c0_9 = arith.constant 0 : index
    %c0_10 = arith.constant 0 : index
    %5 = vector.load %arg11[%c0_9, %c0_10] : memref<8x2xf32, #tpu.memory_space<vmem>>, vector<8x2xf32>
    %c0_11 = arith.constant 0 : index
    %c0_12 = arith.constant 0 : index
    %6 = vector.load %arg12[%c0_11, %c0_12] : memref<8x1xf32, #tpu.memory_space<vmem>>, vector<8x1xf32>
    %c0_13 = arith.constant 0 : index
    %c0_14 = arith.constant 0 : index
    %7 = vector.load %arg13[%c0_13, %c0_14] : memref<1x8xf32, #tpu.memory_space<vmem>>, vector<1x8xf32>
    %c0_15 = arith.constant 0 : index
    %c0_16 = arith.constant 0 : index
    %8 = vector.load %arg14[%c0_15, %c0_16] : memref<1x1xf32, #tpu.memory_space<vmem>>, vector<1x1xf32>
    %c0_17 = arith.constant 0 : index
    %c0_18 = arith.constant 0 : index
    %9 = vector.load %arg15[%c0_17, %c0_18] : memref<8x8xf32, #tpu.memory_space<vmem>>, vector<8x8xf32>
    %c0_19 = arith.constant 0 : index
    %c0_20 = arith.constant 0 : index
    %10 = vector.load %arg16[%c0_19, %c0_20] : memref<8x2xf32, #tpu.memory_space<vmem>>, vector<8x2xf32>
    %c0_21 = arith.constant 0 : index
    %c0_22 = arith.constant 0 : index
    %11 = vector.load %arg17[%c0_21, %c0_22] : memref<8x8xf32, #tpu.memory_space<vmem>>, vector<8x8xf32>
    %c0_23 = arith.constant 0 : index
    %c0_24 = arith.constant 0 : index
    %12 = vector.load %arg18[%c0_23, %c0_24] : memref<8x2xf32, #tpu.memory_space<vmem>>, vector<8x2xf32>
    %c0_25 = arith.constant 0 : index
    %c0_26 = arith.constant 0 : index
    %13 = vector.load %arg19[%c0_25, %c0_26] : memref<8x8xf32, #tpu.memory_space<vmem>>, vector<8x8xf32>
    %c0_27 = arith.constant 0 : index
    %c0_28 = arith.constant 0 : index
    %14 = vector.load %arg20[%c0_27, %c0_28] : memref<8x2xf32, #tpu.memory_space<vmem>>, vector<8x2xf32>
    %c0_29 = arith.constant 0 : index
    %c0_30 = arith.constant 0 : index
    %15 = vector.load %arg21[%c0_29, %c0_30] : memref<8x1xf32, #tpu.memory_space<vmem>>, vector<8x1xf32>
    %c0_31 = arith.constant 0 : index
    %c0_32 = arith.constant 0 : index
    %16 = vector.load %arg22[%c0_31, %c0_32] : memref<8x8xf32, #tpu.memory_space<vmem>>, vector<8x8xf32>
    %c0_33 = arith.constant 0 : index
    %c0_34 = arith.constant 0 : index
    %17 = vector.load %arg23[%c0_33, %c0_34] : memref<8x1xf32, #tpu.memory_space<vmem>>, vector<8x1xf32>
    %c0_35 = arith.constant 0 : index
    %c0_36 = arith.constant 0 : index
    %c0_37 = arith.constant 0 : index
    %18 = vector.load %arg1[%c0_35, %c0_36, %c0_37] : memref<1x2x16xf32, #tpu.memory_space<vmem>>, vector<1x2x16xf32>
    %19 = vector.shape_cast %18 : vector<1x2x16xf32> to vector<2x16xf32>
    %c0_38 = arith.constant 0 : index
    %c0_39 = arith.constant 0 : index
    %c0_40 = arith.constant 0 : index
    %20 = vector.load %arg2[%c0_38, %c0_39, %c0_40] : memref<1x16x128xbf16, #tpu.memory_space<vmem>>, vector<1x16x128xbf16>
    %21 = vector.shape_cast %20 : vector<1x16x128xbf16> to vector<16x128xbf16>
    %c0_41 = arith.constant 0 : index
    %c0_42 = arith.constant 0 : index
    %c0_43 = arith.constant 0 : index
    %22 = vector.load %arg3[%c0_41, %c0_42, %c0_43] : memref<1x16x128xbf16, #tpu.memory_space<vmem>>, vector<1x16x128xbf16>
    %23 = vector.shape_cast %22 : vector<1x16x128xbf16> to vector<16x128xbf16>
    %c0_44 = arith.constant 0 : index
    %c0_45 = arith.constant 0 : index
    %c0_46 = arith.constant 0 : index
    %24 = vector.load %arg4[%c0_44, %c0_45, %c0_46] : memref<1x128x16xbf16, #tpu.memory_space<vmem>>, vector<1x128x16xbf16>
    %25 = vector.shape_cast %24 : vector<1x128x16xbf16> to vector<128x16xbf16>
    %c0_47 = arith.constant 0 : index
    %c0_48 = arith.constant 0 : index
    %c0_49 = arith.constant 0 : index
    %26 = vector.load %arg5[%c0_47, %c0_48, %c0_49] : memref<1x128x16xbf16, #tpu.memory_space<vmem>>, vector<1x128x16xbf16>
    %27 = vector.shape_cast %26 : vector<1x128x16xbf16> to vector<128x16xbf16>
    %28 = arith.truncf %19 : vector<2x16xf32> to vector<2x16xbf16>
    %cst = arith.constant dense<0.000000e+00> : vector<8x16xf32>
    %29 = tpu.matmul %0, %19, %cst {dimension_numbers = #tpu.dot_dimension_numbers<[1], [0], [0], [1], [0, 0, 1, 1], [], []>} : vector<8x2xf32>, vector<2x16xf32>, vector<8x16xf32> -> vector<8x16xf32>
    %30 = vector.broadcast %1 : vector<8x1xf32> to vector<8x16xf32>
    %31 = arith.addf %29, %30 : vector<8x16xf32>
    %32 = math.tanh %31 : vector<8x16xf32>
    %cst_50 = arith.constant dense<0.000000e+00> : vector<2x128xf32>
    %33 = tpu.matmul %28, %23, %cst_50 {dimension_numbers = #tpu.dot_dimension_numbers<[1], [0], [0], [1], [0, 0, 1, 1], [], []>} : vector<2x16xbf16>, vector<16x128xbf16>, vector<2x128xf32> -> vector<2x128xf32>
    %cst_51 = arith.constant dense<0.000000e+00> : vector<2x128xf32>
    %34 = tpu.matmul %28, %21, %cst_51 {dimension_numbers = #tpu.dot_dimension_numbers<[1], [0], [0], [1], [0, 0, 1, 1], [], []>} : vector<2x16xbf16>, vector<16x128xbf16>, vector<2x128xf32> -> vector<2x128xf32>
    %cst_52 = arith.constant dense<0.000000e+00> : vector<8x128xf32>
    %35 = tpu.matmul %3, %33, %cst_52 {dimension_numbers = #tpu.dot_dimension_numbers<[1], [0], [0], [1], [0, 0, 1, 1], [], []>} : vector<8x2xf32>, vector<2x128xf32>, vector<8x128xf32> -> vector<8x128xf32>
    %cst_53 = arith.constant dense<0.000000e+00> : vector<8x128xf32>
    %36 = tpu.matmul %5, %34, %cst_53 {dimension_numbers = #tpu.dot_dimension_numbers<[1], [0], [0], [1], [0, 0, 1, 1], [], []>} : vector<8x2xf32>, vector<2x128xf32>, vector<8x128xf32> -> vector<8x128xf32>
    %37 = arith.addf %35, %36 : vector<8x128xf32>
    %38 = vector.broadcast %6 : vector<8x1xf32> to vector<8x128xf32>
    %39 = arith.addf %37, %38 : vector<8x128xf32>
    %cst_54 = arith.constant dense<0.000000e+00> : vector<8x128xf32>
    %40 = tpu.matmul %10, %33, %cst_54 {dimension_numbers = #tpu.dot_dimension_numbers<[1], [0], [0], [1], [0, 0, 1, 1], [], []>} : vector<8x2xf32>, vector<2x128xf32>, vector<8x128xf32> -> vector<8x128xf32>
    %cst_55 = arith.constant dense<0.000000e+00> : vector<8x128xf32>
    %41 = tpu.matmul %12, %34, %cst_55 {dimension_numbers = #tpu.dot_dimension_numbers<[1], [0], [0], [1], [0, 0, 1, 1], [], []>} : vector<8x2xf32>, vector<2x128xf32>, vector<8x128xf32> -> vector<8x128xf32>
    %cst_56 = arith.constant dense<0.000000e+00> : vector<8x16xf32>
    %42 = tpu.matmul %14, %19, %cst_56 {dimension_numbers = #tpu.dot_dimension_numbers<[1], [0], [0], [1], [0, 0, 1, 1], [], []>} : vector<8x2xf32>, vector<2x16xf32>, vector<8x16xf32> -> vector<8x16xf32>
    %43 = vector.broadcast %15 : vector<8x1xf32> to vector<8x16xf32>
    %44 = arith.addf %42, %43 : vector<8x16xf32>
    %cst_57 = arith.constant 0.000000e+00 : f32
    %45 = vector.broadcast %cst_57 : f32 to vector<1x128xf32>
    %46 = vector.broadcast %8 : vector<1x1xf32> to vector<1x128xf32>
    %47 = arith.addf %45, %46 : vector<1x128xf32>
    %cst_58 = arith.constant 0.000000e+00 : f32
    %48 = vector.broadcast %cst_58 : f32 to vector<8x16xf32>
    %49 = vector.broadcast %17 : vector<8x1xf32> to vector<8x16xf32>
    %50 = arith.addf %48, %49 : vector<8x16xf32>
    %51 = arith.truncf %32 : vector<8x16xf32> to vector<8x16xbf16>
    %cst_59 = arith.constant dense<0.000000e+00> : vector<8x128xf32>
    %52 = tpu.matmul %51, %23, %cst_59 {dimension_numbers = #tpu.dot_dimension_numbers<[1], [0], [0], [1], [0, 0, 1, 1], [], []>} : vector<8x16xbf16>, vector<16x128xbf16>, vector<8x128xf32> -> vector<8x128xf32>
    %cst_60 = arith.constant dense<0.000000e+00> : vector<8x128xf32>
    %53 = tpu.matmul %51, %21, %cst_60 {dimension_numbers = #tpu.dot_dimension_numbers<[1], [0], [0], [1], [0, 0, 1, 1], [], []>} : vector<8x16xbf16>, vector<16x128xbf16>, vector<8x128xf32> -> vector<8x128xf32>
    %cst_61 = arith.constant dense<0.000000e+00> : vector<8x128xf32>
    %54 = tpu.matmul %2, %52, %cst_61 {dimension_numbers = #tpu.dot_dimension_numbers<[1], [0], [0], [1], [0, 0, 1, 1], [], []>} : vector<8x8xf32>, vector<8x128xf32>, vector<8x128xf32> -> vector<8x128xf32>
    %cst_62 = arith.constant dense<0.000000e+00> : vector<8x128xf32>
    %55 = tpu.matmul %4, %53, %cst_62 {dimension_numbers = #tpu.dot_dimension_numbers<[1], [0], [0], [1], [0, 0, 1, 1], [], []>} : vector<8x8xf32>, vector<8x128xf32>, vector<8x128xf32> -> vector<8x128xf32>
    %56 = arith.addf %54, %55 : vector<8x128xf32>
    %57 = arith.addf %56, %39 : vector<8x128xf32>
    %58 = math.tanh %57 : vector<8x128xf32>
    %cst_63 = arith.constant dense<0.000000e+00> : vector<1x128xf32>
    %59 = tpu.matmul %7, %58, %cst_63 {dimension_numbers = #tpu.dot_dimension_numbers<[1], [0], [0], [1], [0, 0, 1, 1], [], []>} : vector<1x8xf32>, vector<8x128xf32>, vector<1x128xf32> -> vector<1x128xf32>
    %60 = arith.addf %59, %47 : vector<1x128xf32>
    %61 = arith.negf %60 : vector<1x128xf32>
    %62 = math.exp %61 : vector<1x128xf32>
    %cst_64 = arith.constant 1.000000e+00 : f32
    %63 = vector.broadcast %cst_64 : f32 to vector<1x128xf32>
    %64 = arith.addf %63, %62 : vector<1x128xf32>
    %65 = arith.divf %63, %64 : vector<1x128xf32>
    %cst_65 = arith.constant dense<0.000000e+00> : vector<8x128xf32>
    %66 = tpu.matmul %9, %52, %cst_65 {dimension_numbers = #tpu.dot_dimension_numbers<[1], [0], [0], [1], [0, 0, 1, 1], [], []>} : vector<8x8xf32>, vector<8x128xf32>, vector<8x128xf32> -> vector<8x128xf32>
    %67 = arith.addf %66, %40 : vector<8x128xf32>
    %cst_66 = arith.constant dense<0.000000e+00> : vector<8x128xf32>
    %68 = tpu.matmul %11, %53, %cst_66 {dimension_numbers = #tpu.dot_dimension_numbers<[1], [0], [0], [1], [0, 0, 1, 1], [], []>} : vector<8x8xf32>, vector<8x128xf32>, vector<8x128xf32> -> vector<8x128xf32>
    %69 = arith.addf %68, %41 : vector<8x128xf32>
    %70 = vector.broadcast %65 : vector<1x128xf32> to vector<8x128xf32>
    %71 = arith.mulf %67, %70 : vector<8x128xf32>
    %72 = arith.truncf %71 : vector<8x128xf32> to vector<8x128xbf16>
    %cst_67 = arith.constant dense<0.000000e+00> : vector<8x16xf32>
    %73 = tpu.matmul %72, %25, %cst_67 {dimension_numbers = #tpu.dot_dimension_numbers<[1], [0], [0], [1], [0, 0, 1, 1], [], []>} : vector<8x128xbf16>, vector<128x16xbf16>, vector<8x16xf32> -> vector<8x16xf32>
    %74 = vector.broadcast %65 : vector<1x128xf32> to vector<8x128xf32>
    %75 = arith.mulf %69, %74 : vector<8x128xf32>
    %76 = arith.truncf %75 : vector<8x128xf32> to vector<8x128xbf16>
    %cst_68 = arith.constant dense<0.000000e+00> : vector<8x16xf32>
    %77 = tpu.matmul %76, %27, %cst_68 {dimension_numbers = #tpu.dot_dimension_numbers<[1], [0], [0], [1], [0, 0, 1, 1], [], []>} : vector<8x128xbf16>, vector<128x16xbf16>, vector<8x16xf32> -> vector<8x16xf32>
    %78 = arith.addf %73, %77 : vector<8x16xf32>
    %cst_69 = arith.constant dense<0.000000e+00> : vector<8x16xf32>
    %79 = tpu.matmul %13, %32, %cst_69 {dimension_numbers = #tpu.dot_dimension_numbers<[1], [0], [0], [1], [0, 0, 1, 1], [], []>} : vector<8x8xf32>, vector<8x16xf32>, vector<8x16xf32> -> vector<8x16xf32>
    %80 = arith.addf %78, %79 : vector<8x16xf32>
    %81 = arith.addf %80, %44 : vector<8x16xf32>
    %82 = math.tanh %81 : vector<8x16xf32>
    %cst_70 = arith.constant dense<0.000000e+00> : vector<8x16xf32>
    %83 = tpu.matmul %16, %82, %cst_70 {dimension_numbers = #tpu.dot_dimension_numbers<[1], [0], [0], [1], [0, 0, 1, 1], [], []>} : vector<8x8xf32>, vector<8x16xf32>, vector<8x16xf32> -> vector<8x16xf32>
    %84 = arith.addf %83, %50 : vector<8x16xf32>
    %85 = math.tanh %84 : vector<8x16xf32>
    %86 = arith.truncf %85 : vector<8x16xf32> to vector<8x16xbf16>
    %cst_71 = arith.constant dense<0.000000e+00> : vector<8x128xf32>
    %87 = tpu.matmul %86, %23, %cst_71 {dimension_numbers = #tpu.dot_dimension_numbers<[1], [0], [0], [1], [0, 0, 1, 1], [], []>} : vector<8x16xbf16>, vector<16x128xbf16>, vector<8x128xf32> -> vector<8x128xf32>
    %cst_72 = arith.constant dense<0.000000e+00> : vector<8x128xf32>
    %88 = tpu.matmul %86, %21, %cst_72 {dimension_numbers = #tpu.dot_dimension_numbers<[1], [0], [0], [1], [0, 0, 1, 1], [], []>} : vector<8x16xbf16>, vector<16x128xbf16>, vector<8x128xf32> -> vector<8x128xf32>
    %cst_73 = arith.constant dense<0.000000e+00> : vector<8x128xf32>
    %89 = tpu.matmul %2, %87, %cst_73 {dimension_numbers = #tpu.dot_dimension_numbers<[1], [0], [0], [1], [0, 0, 1, 1], [], []>} : vector<8x8xf32>, vector<8x128xf32>, vector<8x128xf32> -> vector<8x128xf32>
    %cst_74 = arith.constant dense<0.000000e+00> : vector<8x128xf32>
    %90 = tpu.matmul %4, %88, %cst_74 {dimension_numbers = #tpu.dot_dimension_numbers<[1], [0], [0], [1], [0, 0, 1, 1], [], []>} : vector<8x8xf32>, vector<8x128xf32>, vector<8x128xf32> -> vector<8x128xf32>
    %91 = arith.addf %89, %90 : vector<8x128xf32>
    %92 = arith.addf %91, %39 : vector<8x128xf32>
    %93 = math.tanh %92 : vector<8x128xf32>
    %cst_75 = arith.constant dense<0.000000e+00> : vector<1x128xf32>
    %94 = tpu.matmul %7, %93, %cst_75 {dimension_numbers = #tpu.dot_dimension_numbers<[1], [0], [0], [1], [0, 0, 1, 1], [], []>} : vector<1x8xf32>, vector<8x128xf32>, vector<1x128xf32> -> vector<1x128xf32>
    %95 = arith.addf %94, %47 : vector<1x128xf32>
    %96 = arith.negf %95 : vector<1x128xf32>
    %97 = math.exp %96 : vector<1x128xf32>
    %cst_76 = arith.constant 1.000000e+00 : f32
    %98 = vector.broadcast %cst_76 : f32 to vector<1x128xf32>
    %99 = arith.addf %98, %97 : vector<1x128xf32>
    %100 = arith.divf %98, %99 : vector<1x128xf32>
    %cst_77 = arith.constant dense<0.000000e+00> : vector<8x128xf32>
    %101 = tpu.matmul %9, %87, %cst_77 {dimension_numbers = #tpu.dot_dimension_numbers<[1], [0], [0], [1], [0, 0, 1, 1], [], []>} : vector<8x8xf32>, vector<8x128xf32>, vector<8x128xf32> -> vector<8x128xf32>
    %102 = arith.addf %101, %40 : vector<8x128xf32>
    %cst_78 = arith.constant dense<0.000000e+00> : vector<8x128xf32>
    %103 = tpu.matmul %11, %88, %cst_78 {dimension_numbers = #tpu.dot_dimension_numbers<[1], [0], [0], [1], [0, 0, 1, 1], [], []>} : vector<8x8xf32>, vector<8x128xf32>, vector<8x128xf32> -> vector<8x128xf32>
    %104 = arith.addf %103, %41 : vector<8x128xf32>
    %105 = vector.broadcast %100 : vector<1x128xf32> to vector<8x128xf32>
    %106 = arith.mulf %102, %105 : vector<8x128xf32>
    %107 = arith.truncf %106 : vector<8x128xf32> to vector<8x128xbf16>
    %cst_79 = arith.constant dense<0.000000e+00> : vector<8x16xf32>
    %108 = tpu.matmul %107, %25, %cst_79 {dimension_numbers = #tpu.dot_dimension_numbers<[1], [0], [0], [1], [0, 0, 1, 1], [], []>} : vector<8x128xbf16>, vector<128x16xbf16>, vector<8x16xf32> -> vector<8x16xf32>
    %109 = vector.broadcast %100 : vector<1x128xf32> to vector<8x128xf32>
    %110 = arith.mulf %104, %109 : vector<8x128xf32>
    %111 = arith.truncf %110 : vector<8x128xf32> to vector<8x128xbf16>
    %cst_80 = arith.constant dense<0.000000e+00> : vector<8x16xf32>
    %112 = tpu.matmul %111, %27, %cst_80 {dimension_numbers = #tpu.dot_dimension_numbers<[1], [0], [0], [1], [0, 0, 1, 1], [], []>} : vector<8x128xbf16>, vector<128x16xbf16>, vector<8x16xf32> -> vector<8x16xf32>
    %113 = arith.addf %108, %112 : vector<8x16xf32>
    %cst_81 = arith.constant dense<0.000000e+00> : vector<8x16xf32>
    %114 = tpu.matmul %13, %85, %cst_81 {dimension_numbers = #tpu.dot_dimension_numbers<[1], [0], [0], [1], [0, 0, 1, 1], [], []>} : vector<8x8xf32>, vector<8x16xf32>, vector<8x16xf32> -> vector<8x16xf32>
    %115 = arith.addf %113, %114 : vector<8x16xf32>
    %116 = arith.addf %115, %44 : vector<8x16xf32>
    %117 = math.tanh %116 : vector<8x16xf32>
    %cst_82 = arith.constant dense<0.000000e+00> : vector<8x16xf32>
    %118 = tpu.matmul %16, %117, %cst_82 {dimension_numbers = #tpu.dot_dimension_numbers<[1], [0], [0], [1], [0, 0, 1, 1], [], []>} : vector<8x8xf32>, vector<8x16xf32>, vector<8x16xf32> -> vector<8x16xf32>
    %119 = arith.addf %118, %50 : vector<8x16xf32>
    %120 = math.tanh %119 : vector<8x16xf32>
    %121 = arith.truncf %120 : vector<8x16xf32> to vector<8x16xbf16>
    %cst_83 = arith.constant dense<0.000000e+00> : vector<8x128xf32>
    %122 = tpu.matmul %121, %23, %cst_83 {dimension_numbers = #tpu.dot_dimension_numbers<[1], [0], [0], [1], [0, 0, 1, 1], [], []>} : vector<8x16xbf16>, vector<16x128xbf16>, vector<8x128xf32> -> vector<8x128xf32>
    %cst_84 = arith.constant dense<0.000000e+00> : vector<8x128xf32>
    %123 = tpu.matmul %121, %21, %cst_84 {dimension_numbers = #tpu.dot_dimension_numbers<[1], [0], [0], [1], [0, 0, 1, 1], [], []>} : vector<8x16xbf16>, vector<16x128xbf16>, vector<8x128xf32> -> vector<8x128xf32>
    %cst_85 = arith.constant dense<0.000000e+00> : vector<8x128xf32>
    %124 = tpu.matmul %2, %122, %cst_85 {dimension_numbers = #tpu.dot_dimension_numbers<[1], [0], [0], [1], [0, 0, 1, 1], [], []>} : vector<8x8xf32>, vector<8x128xf32>, vector<8x128xf32> -> vector<8x128xf32>
    %cst_86 = arith.constant dense<0.000000e+00> : vector<8x128xf32>
    %125 = tpu.matmul %4, %123, %cst_86 {dimension_numbers = #tpu.dot_dimension_numbers<[1], [0], [0], [1], [0, 0, 1, 1], [], []>} : vector<8x8xf32>, vector<8x128xf32>, vector<8x128xf32> -> vector<8x128xf32>
    %126 = arith.addf %124, %125 : vector<8x128xf32>
    %127 = arith.addf %126, %39 : vector<8x128xf32>
    %128 = math.tanh %127 : vector<8x128xf32>
    %cst_87 = arith.constant dense<0.000000e+00> : vector<1x128xf32>
    %129 = tpu.matmul %7, %128, %cst_87 {dimension_numbers = #tpu.dot_dimension_numbers<[1], [0], [0], [1], [0, 0, 1, 1], [], []>} : vector<1x8xf32>, vector<8x128xf32>, vector<1x128xf32> -> vector<1x128xf32>
    %130 = arith.addf %129, %47 : vector<1x128xf32>
    %131 = arith.negf %130 : vector<1x128xf32>
    %132 = math.exp %131 : vector<1x128xf32>
    %cst_88 = arith.constant 1.000000e+00 : f32
    %133 = vector.broadcast %cst_88 : f32 to vector<1x128xf32>
    %134 = arith.addf %133, %132 : vector<1x128xf32>
    %135 = arith.divf %133, %134 : vector<1x128xf32>
    %cst_89 = arith.constant dense<0.000000e+00> : vector<8x128xf32>
    %136 = tpu.matmul %9, %122, %cst_89 {dimension_numbers = #tpu.dot_dimension_numbers<[1], [0], [0], [1], [0, 0, 1, 1], [], []>} : vector<8x8xf32>, vector<8x128xf32>, vector<8x128xf32> -> vector<8x128xf32>
    %137 = arith.addf %136, %40 : vector<8x128xf32>
    %cst_90 = arith.constant dense<0.000000e+00> : vector<8x128xf32>
    %138 = tpu.matmul %11, %123, %cst_90 {dimension_numbers = #tpu.dot_dimension_numbers<[1], [0], [0], [1], [0, 0, 1, 1], [], []>} : vector<8x8xf32>, vector<8x128xf32>, vector<8x128xf32> -> vector<8x128xf32>
    %139 = arith.addf %138, %41 : vector<8x128xf32>
    %140 = vector.broadcast %135 : vector<1x128xf32> to vector<8x128xf32>
    %141 = arith.mulf %137, %140 : vector<8x128xf32>
    %142 = arith.truncf %141 : vector<8x128xf32> to vector<8x128xbf16>
    %cst_91 = arith.constant dense<0.000000e+00> : vector<8x16xf32>
    %143 = tpu.matmul %142, %25, %cst_91 {dimension_numbers = #tpu.dot_dimension_numbers<[1], [0], [0], [1], [0, 0, 1, 1], [], []>} : vector<8x128xbf16>, vector<128x16xbf16>, vector<8x16xf32> -> vector<8x16xf32>
    %144 = vector.broadcast %135 : vector<1x128xf32> to vector<8x128xf32>
    %145 = arith.mulf %139, %144 : vector<8x128xf32>
    %146 = arith.truncf %145 : vector<8x128xf32> to vector<8x128xbf16>
    %cst_92 = arith.constant dense<0.000000e+00> : vector<8x16xf32>
    %147 = tpu.matmul %146, %27, %cst_92 {dimension_numbers = #tpu.dot_dimension_numbers<[1], [0], [0], [1], [0, 0, 1, 1], [], []>} : vector<8x128xbf16>, vector<128x16xbf16>, vector<8x16xf32> -> vector<8x16xf32>
    %148 = arith.addf %143, %147 : vector<8x16xf32>
    %cst_93 = arith.constant dense<0.000000e+00> : vector<8x16xf32>
    %149 = tpu.matmul %13, %120, %cst_93 {dimension_numbers = #tpu.dot_dimension_numbers<[1], [0], [0], [1], [0, 0, 1, 1], [], []>} : vector<8x8xf32>, vector<8x16xf32>, vector<8x16xf32> -> vector<8x16xf32>
    %150 = arith.addf %148, %149 : vector<8x16xf32>
    %151 = arith.addf %150, %44 : vector<8x16xf32>
    %152 = math.tanh %151 : vector<8x16xf32>
    %cst_94 = arith.constant dense<0.000000e+00> : vector<8x16xf32>
    %153 = tpu.matmul %16, %152, %cst_94 {dimension_numbers = #tpu.dot_dimension_numbers<[1], [0], [0], [1], [0, 0, 1, 1], [], []>} : vector<8x8xf32>, vector<8x16xf32>, vector<8x16xf32> -> vector<8x16xf32>
    %154 = arith.addf %153, %50 : vector<8x16xf32>
    %155 = math.tanh %154 : vector<8x16xf32>
    %156 = arith.truncf %155 : vector<8x16xf32> to vector<8x16xbf16>
    %cst_95 = arith.constant dense<0.000000e+00> : vector<8x128xf32>
    %157 = tpu.matmul %156, %23, %cst_95 {dimension_numbers = #tpu.dot_dimension_numbers<[1], [0], [0], [1], [0, 0, 1, 1], [], []>} : vector<8x16xbf16>, vector<16x128xbf16>, vector<8x128xf32> -> vector<8x128xf32>
    %cst_96 = arith.constant dense<0.000000e+00> : vector<8x128xf32>
    %158 = tpu.matmul %156, %21, %cst_96 {dimension_numbers = #tpu.dot_dimension_numbers<[1], [0], [0], [1], [0, 0, 1, 1], [], []>} : vector<8x16xbf16>, vector<16x128xbf16>, vector<8x128xf32> -> vector<8x128xf32>
    %cst_97 = arith.constant dense<0.000000e+00> : vector<8x128xf32>
    %159 = tpu.matmul %2, %157, %cst_97 {dimension_numbers = #tpu.dot_dimension_numbers<[1], [0], [0], [1], [0, 0, 1, 1], [], []>} : vector<8x8xf32>, vector<8x128xf32>, vector<8x128xf32> -> vector<8x128xf32>
    %cst_98 = arith.constant dense<0.000000e+00> : vector<8x128xf32>
    %160 = tpu.matmul %4, %158, %cst_98 {dimension_numbers = #tpu.dot_dimension_numbers<[1], [0], [0], [1], [0, 0, 1, 1], [], []>} : vector<8x8xf32>, vector<8x128xf32>, vector<8x128xf32> -> vector<8x128xf32>
    %161 = arith.addf %159, %160 : vector<8x128xf32>
    %162 = arith.addf %161, %39 : vector<8x128xf32>
    %163 = math.tanh %162 : vector<8x128xf32>
    %cst_99 = arith.constant dense<0.000000e+00> : vector<1x128xf32>
    %164 = tpu.matmul %7, %163, %cst_99 {dimension_numbers = #tpu.dot_dimension_numbers<[1], [0], [0], [1], [0, 0, 1, 1], [], []>} : vector<1x8xf32>, vector<8x128xf32>, vector<1x128xf32> -> vector<1x128xf32>
    %165 = arith.addf %164, %47 : vector<1x128xf32>
    %166 = arith.negf %165 : vector<1x128xf32>
    %167 = math.exp %166 : vector<1x128xf32>
    %cst_100 = arith.constant 1.000000e+00 : f32
    %168 = vector.broadcast %cst_100 : f32 to vector<1x128xf32>
    %169 = arith.addf %168, %167 : vector<1x128xf32>
    %170 = arith.divf %168, %169 : vector<1x128xf32>
    %c0_101 = arith.constant 0 : index
    %c0_102 = arith.constant 0 : index
    %c0_103 = arith.constant 0 : index
    %171 = vector.load %arg24[%c0_101, %c0_102, %c0_103] : memref<1x1x128xf32, #tpu.memory_space<vmem>>, vector<1x1x128xf32>
    %172 = vector.shape_cast %171 : vector<1x1x128xf32> to vector<1x128xf32>
    %173 = vector.shape_cast %170 : vector<1x128xf32> to vector<1x1x128xf32>
    tpu.vector_store %arg24[%c0_101, %c0_102, %c0_103], %173 {strides = array<i32>} : memref<1x1x128xf32, #tpu.memory_space<vmem>>, vector<1x1x128xf32>,
    return
  }
  func.func @transform_0(%arg0: i32) -> (i32, i32, i32) {
    %c0_i32 = arith.constant 0 : i32
    %c0_i32_0 = arith.constant 0 : i32
    %c0_i32_1 = arith.constant 0 : i32
    return %arg0, %c0_i32, %c0_i32_0 : i32, i32, i32
  }
  func.func @transform_1(%arg0: i32) -> (i32, i32, i32) {
    %c0_i32 = arith.constant 0 : i32
    %c0_i32_0 = arith.constant 0 : i32
    %c0_i32_1 = arith.constant 0 : i32
    return %arg0, %c0_i32, %c0_i32_0 : i32, i32, i32
  }
  func.func @transform_2(%arg0: i32) -> (i32, i32, i32) {
    %c0_i32 = arith.constant 0 : i32
    %c0_i32_0 = arith.constant 0 : i32
    %c0_i32_1 = arith.constant 0 : i32
    return %arg0, %c0_i32, %c0_i32_0 : i32, i32, i32
  }
  func.func @transform_3(%arg0: i32) -> (i32, i32, i32) {
    %c0_i32 = arith.constant 0 : i32
    %c0_i32_0 = arith.constant 0 : i32
    %c0_i32_1 = arith.constant 0 : i32
    return %arg0, %c0_i32, %c0_i32_0 : i32, i32, i32
  }
  func.func @transform_4(%arg0: i32) -> (i32, i32, i32) {
    %c0_i32 = arith.constant 0 : i32
    %c0_i32_0 = arith.constant 0 : i32
    %c0_i32_1 = arith.constant 0 : i32
    return %arg0, %c0_i32, %c0_i32_0 : i32, i32, i32
  }
  func.func @transform_5(%arg0: i32) -> (i32, i32) {
    %c0_i32 = arith.constant 0 : i32
    %c0_i32_0 = arith.constant 0 : i32
    %c0_i32_1 = arith.constant 0 : i32
    return %c0_i32, %c0_i32_0 : i32, i32
  }
  func.func @transform_6(%arg0: i32) -> (i32, i32) {
    %c0_i32 = arith.constant 0 : i32
    %c0_i32_0 = arith.constant 0 : i32
    %c0_i32_1 = arith.constant 0 : i32
    return %c0_i32, %c0_i32_0 : i32, i32
  }
  func.func @transform_7(%arg0: i32) -> (i32, i32) {
    %c0_i32 = arith.constant 0 : i32
    %c0_i32_0 = arith.constant 0 : i32
    %c0_i32_1 = arith.constant 0 : i32
    return %c0_i32, %c0_i32_0 : i32, i32
  }
  func.func @transform_8(%arg0: i32) -> (i32, i32) {
    %c0_i32 = arith.constant 0 : i32
    %c0_i32_0 = arith.constant 0 : i32
    %c0_i32_1 = arith.constant 0 : i32
    return %c0_i32, %c0_i32_0 : i32, i32
  }
  func.func @transform_9(%arg0: i32) -> (i32, i32) {
    %c0_i32 = arith.constant 0 : i32
    %c0_i32_0 = arith.constant 0 : i32
    %c0_i32_1 = arith.constant 0 : i32
    return %c0_i32, %c0_i32_0 : i32, i32
  }
  func.func @transform_10(%arg0: i32) -> (i32, i32) {
    %c0_i32 = arith.constant 0 : i32
    %c0_i32_0 = arith.constant 0 : i32
    %c0_i32_1 = arith.constant 0 : i32
    return %c0_i32, %c0_i32_0 : i32, i32
  }
  func.func @transform_11(%arg0: i32) -> (i32, i32) {
    %c0_i32 = arith.constant 0 : i32
    %c0_i32_0 = arith.constant 0 : i32
    %c0_i32_1 = arith.constant 0 : i32
    return %c0_i32, %c0_i32_0 : i32, i32
  }
  func.func @transform_12(%arg0: i32) -> (i32, i32) {
    %c0_i32 = arith.constant 0 : i32
    %c0_i32_0 = arith.constant 0 : i32
    %c0_i32_1 = arith.constant 0 : i32
    return %c0_i32, %c0_i32_0 : i32, i32
  }
  func.func @transform_13(%arg0: i32) -> (i32, i32) {
    %c0_i32 = arith.constant 0 : i32
    %c0_i32_0 = arith.constant 0 : i32
    %c0_i32_1 = arith.constant 0 : i32
    return %c0_i32, %c0_i32_0 : i32, i32
  }
  func.func @transform_14(%arg0: i32) -> (i32, i32) {
    %c0_i32 = arith.constant 0 : i32
    %c0_i32_0 = arith.constant 0 : i32
    %c0_i32_1 = arith.constant 0 : i32
    return %c0_i32, %c0_i32_0 : i32, i32
  }
  func.func @transform_15(%arg0: i32) -> (i32, i32) {
    %c0_i32 = arith.constant 0 : i32
    %c0_i32_0 = arith.constant 0 : i32
    %c0_i32_1 = arith.constant 0 : i32
    return %c0_i32, %c0_i32_0 : i32, i32
  }
  func.func @transform_16(%arg0: i32) -> (i32, i32) {
    %c0_i32 = arith.constant 0 : i32
    %c0_i32_0 = arith.constant 0 : i32
    %c0_i32_1 = arith.constant 0 : i32
    return %c0_i32, %c0_i32_0 : i32, i32
  }
  func.func @transform_17(%arg0: i32) -> (i32, i32) {
    %c0_i32 = arith.constant 0 : i32
    %c0_i32_0 = arith.constant 0 : i32
    %c0_i32_1 = arith.constant 0 : i32
    return %c0_i32, %c0_i32_0 : i32, i32
  }
  func.func @transform_18(%arg0: i32) -> (i32, i32) {
    %c0_i32 = arith.constant 0 : i32
    %c0_i32_0 = arith.constant 0 : i32
    %c0_i32_1 = arith.constant 0 : i32
    return %c0_i32, %c0_i32_0 : i32, i32
  }
  func.func @transform_19(%arg0: i32) -> (i32, i32) {
    %c0_i32 = arith.constant 0 : i32
    %c0_i32_0 = arith.constant 0 : i32
    %c0_i32_1 = arith.constant 0 : i32
    return %c0_i32, %c0_i32_0 : i32, i32
  }
  func.func @transform_20(%arg0: i32) -> (i32, i32) {
    %c0_i32 = arith.constant 0 : i32
    %c0_i32_0 = arith.constant 0 : i32
    %c0_i32_1 = arith.constant 0 : i32
    return %c0_i32, %c0_i32_0 : i32, i32
  }
  func.func @transform_21(%arg0: i32) -> (i32, i32) {
    %c0_i32 = arith.constant 0 : i32
    %c0_i32_0 = arith.constant 0 : i32
    %c0_i32_1 = arith.constant 0 : i32
    return %c0_i32, %c0_i32_0 : i32, i32
  }
  func.func @transform_22(%arg0: i32) -> (i32, i32) {
    %c0_i32 = arith.constant 0 : i32
    %c0_i32_0 = arith.constant 0 : i32
    %c0_i32_1 = arith.constant 0 : i32
    return %c0_i32, %c0_i32_0 : i32, i32
  }
  func.func @transform_23(%arg0: i32) -> (i32, i32, i32) {
    %c0_i32 = arith.constant 0 : i32
    %c0_i32_0 = arith.constant 0 : i32
    %c0_i32_1 = arith.constant 0 : i32
    return %arg0, %c0_i32, %c0_i32_0 : i32, i32, i32
  }
}

</mosaic_0001>

<bundles_post_ra>
// kernel: tpu_custom_call.1
= control target key start
LH: loop header
LB: loop body
LE: loop exit
PB: predicated region body
PF: predicated region fallthrough
CT: control target
= control target key end

     0   :  { %s5419_s0 = inlined_call_operand.vmem [shape: f32[2,2,16], index: 0, kind: input, shape index: {}]   ;;  %s5420_s1 = inlined_call_operand.vmem [shape: bf16[2,16,128], index: 1, kind: input, shape index: {}]   ;;  %s5421_s2 = inlined_call_operand.vmem [shape: bf16[2,16,128], index: 2, kind: input, shape index: {}]   ;;  %s5422_s3 = inlined_call_operand.vmem [shape: bf16[2,128,16], index: 3, kind: input, shape index: {}]   ;;  %s5423_s4 = inlined_call_operand.vmem [shape: bf16[2,128,16], index: 4, kind: input, shape index: {}]   ;;  %s5424_s5 = inlined_call_operand.vmem [shape: f32[8,2], index: 5, kind: input, shape index: {}]   ;;  %s5425_s6 = inlined_call_operand.vmem [shape: f32[8,1], index: 6, kind: input, shape index: {}]   ;;  %s5426_s7 = inlined_call_operand.vmem [shape: f32[8,8], index: 7, kind: input, shape index: {}]   ;;  %s5427_s8 = inlined_call_operand.vmem [shape: f32[8,2], index: 8, kind: input, shape index: {}]   ;;  %s5428_s9 = inlined_call_operand.vmem [shape: f32[8,8], index: 9, kind: input, shape index: {}]   ;;  %s5429_s10 = inlined_call_operand.vmem [shape: f32[8,2], index: 10, kind: input, shape index: {}]   ;;  %s5430_s11 = inlined_call_operand.vmem [shape: f32[8,1], index: 11, kind: input, shape index: {}]   ;;  %s5431_s12 = inlined_call_operand.vmem [shape: f32[1,8], index: 12, kind: input, shape index: {}]   ;;  %s5432_s13 = inlined_call_operand.<no memory space> [shape: f32[1,1], index: 13, kind: input, shape index: {}]   ;;  %s5433_s14 = inlined_call_operand.vmem [shape: f32[8,8], index: 14, kind: input, shape index: {}]   ;;  %s5434_s15 = inlined_call_operand.vmem [shape: f32[8,2], index: 15, kind: input, shape index: {}]   ;;  %s5435_s16 = inlined_call_operand.vmem [shape: f32[8,8], index: 16, kind: input, shape index: {}]   ;;  %s5436_s17 = inlined_call_operand.vmem [shape: f32[8,2], index: 17, kind: input, shape index: {}]   ;;  %s5437_s18 = inlined_call_operand.vmem [shape: f32[8,8], index: 18, kind: input, shape index: {}]   ;;  %s5438_s19 = inlined_call_operand.vmem [shape: f32[8,2], index: 19, kind: input, shape index: {}]   ;;  %s5439_s20 = inlined_call_operand.vmem [shape: f32[8,1], index: 20, kind: input, shape index: {}]   ;;  %s5440_s21 = inlined_call_operand.vmem [shape: f32[8,8], index: 21, kind: input, shape index: {}]   ;;  %s5441_s22 = inlined_call_operand.vmem [shape: f32[8,1], index: 22, kind: input, shape index: {}]   ;;  %s5442_s23 = inlined_call_operand.hbm [shape: f32[2,1,128], index: 23, kind: output, shape index: {}]  }
   0x1   :  { %5454 = sst [smem:[#allocation15_spill]] %s5419_s0  ;;  %v28_v0 = vstv %s5432_s13 }
   0x2   :  { %5455 = sst [smem:[#allocation16_spill]] %s5420_s1  ;;  %29 = vst [vmem:[#allocation2] sm:$0x1] %v28_v0 }
   0x3   :  { %5456 = sst [smem:[#allocation17_spill]] %s5421_s2 }
   0x4   :  { %5457 = sst [smem:[#allocation18_spill]] %s5422_s3 }
   0x5   :  { %5458 = sst [smem:[#allocation19_spill]] %s5423_s4 }
   0x6   :  { %5459 = sst [smem:[#allocation20_spill]] %s5424_s5 }
   0x7   :  { %5460 = sst [smem:[#allocation21_spill]] %s5425_s6 }
   0x8   :  { %5461 = sst [smem:[#allocation22_spill]] %s5426_s7 }
   0x9   :  { %5462 = sst [smem:[#allocation23_spill]] %s5437_s18 }
   0xa   :  { %5463 = sst [smem:[#allocation24_spill]] %s5440_s21 }
   0xb   :  { %5464 = sst [smem:[#allocation25_spill]] %s5442_s23 }
   0xc   :  { %30 = vsyncpa [#allocation4], 0 }
   0xd   :  { %32 = vsyncpa [#allocation4 + $0x1], 0  ;;  %s4823_s24 = smov 0   ;;  %s4825_s25 = smov 0  }
   0xe   :  { %s4827_s5 = smov 0   ;;  %s4829_s1 = smov 0  }
   0xf LB: > { %5465 = sst [smem:[#allocation6_spill]] %s4682_s24  ;;  %s4844_s13 = sadd.s32 4294967295, %s4694_s1   ;;  %s4694_s1 = sphi %s4829_s1, %s5493_s1   ;;  %s4690_s5 = sphi %s4827_s5, %s5496_s5   ;;  %s4686_s25 = sphi %s4825_s25, %s5495_s25   ;;  %s4682_s24 = sphi %s4823_s24, %s5494_s24  }
  0x10   : > { %5466 = sst [smem:[#allocation7_spill]] %s4686_s25  ;;  %s3981_s26 = sadd.s32 4294967294, %s4694_s1  }
  0x11   : > { %5467 = sst [smem:[#allocation8_spill]] %s4690_s5  ;;  %s4848_s2 = sadd.s32 1, %s4694_s1  }
  0x12   : > { %5468 = sst [smem:[#allocation9_spill]] %s4694_s1  ;;  %s553_s6 = sadd.s32 1, %s4690_s5 }
  0x13   : > { %5469 = sst [smem:[#allocation10_spill]] %s4844_s13  ;;  %s550_s27 = ssub.s32 %s4694_s1, %s4848_s2 }
  0x14   : > { %5470 = sst [smem:[#allocation11_spill]] %s4848_s2  ;;  %p563_p0 = scmp.ne.s32.totalorder %s4690_s5, %s4686_s25 }
  0x15   : > { %p551_p1 = scmp.eq.s32.totalorder %s550_s27, 0  ;;  %p564_p2 = scmp.eq.s32.totalorder %s4844_s13, 1 }
  0x16   : > { %p569_p3 = scmp.ne.s32.totalorder %s4686_s25, %s4682_s24  ;;  %p570_p4 = scmp.eq.s32.totalorder %s3981_s26, 1 }
  0x17   : > { %s4859_s7 = scalar_select %p551_p1, %s4690_s5, %s553_s6  }
  0x18   : > { %p4861_p5 = por %p564_p2, %p563_p0  ;;  %p4865_p6 = por %p570_p4, %p569_p3 }
  0x19   : > { %5471 = sst [smem:[#allocation12_spill]] %s4859_s7  ;;  %p3984_p7 = scmp.ge.s32.totalorder %s4694_s1, 1 }
  0x1a   : > { %s5472_s28 = scalar_select %p4861_p5, 1, 0 }
  0x1b   : > { %s5474_s29 = scalar_select %p4865_p6, 1, 0 }
  0x1c   : > { %5473 = sst [smem:[#allocation13_spill]] %s5472_s28  ;;  %p681_p8 = scmp.lt.s32.totalorder %s4694_s1, 3 }
  0x1d   : > { %5475 = sst [smem:[#allocation14_spill]] %s5474_s29 }
  0x1e   : > { %p682_p9 = pnand %p3984_p7, %p681_p8 }
  0x1f   : > { %p763_p10 = scmp.lt.s32.totalorder (!%p682_p9), %s4844_s13, 1  ;;  %s5476_s4 = sld [smem:[#allocation21_spill]] (!%p682_p9) }
  0x20   : > { %685 = sbr.rel (%p682_p9) target bundleno = 4110 (0x100e), region = 112  ;;  %s5477_s5 = sld [smem:[#allocation15_spill]] (!%p682_p9) }
  0x21   : > { %s5478_s0 = sld [smem:[#allocation16_spill]] (!%p682_p9) }
  0x22   : > { %s5479_s23 = sld [smem:[#allocation20_spill]] (!%p682_p9) }
  0x23   : > { %s5480_s18 = sld [smem:[#allocation17_spill]] (!%p682_p9) }
  0x24   : > { %s5481_s27 = sld [smem:[#allocation19_spill]] (!%p682_p9) }
  0x25   : > { %v4696_v1 = vmov 0.0   ;;  %vm4697_vm0 = vmmov 0   ;;  %v789_v2 = vld [vmem:[%s5476_s4] sm:$0xff]  ;;  %s764_s30 = scalar_select %p763_p10, %s4844_s13, 1  ;;  %v4698_v3 = vmov 0   ;;  %vm853_vm1 = vcmask 1041408  }
  0x26   : > { %4203 = vmatprep.subr.mxu0 %v4696_v1  ;;  %4205 = vmatprep.mubr.msk.f32.mxu0 %vm4697_vm0, %v4696_v1  ;;  %vm849_vm2 = vcmask 15360   ;;  %v794_v5 = vld [vmem:[%s5430_s11] sm:$0xff]  ;;  %vm934_vm3 = vcmask 130048   ;;  %s5482_s1 = sld [smem:[#allocation18_spill]]  ;;  %vm1506_vm4 = vcmask 64512  }
  0x27   : > { %4208 = vmatprep.subr.bf16.mxu1 %v4696_v1  ;;  %4210 = vmatprep.mubr.msk.bf16.mxu1 %vm4697_vm0, %v4696_v1  ;;  %s3985_s26 = sshll.u32 %s764_s30, 1  ;;  %s4065_s6 = sshll.u32 %s764_s30, 3  ;;  %v805_v10 = vld [vmem:[%s5441_s22] sm:$0xff] }
  0x28   : > { %4575 = vset.pattern.permute.xlu0 %v4698_v3  ;;  %4576 = vset.pattern.permute.xlu1 %v4698_v3  ;;  %s766_s2 = scalar_lea.vmem %s5477_s5, %s3985_s26  ;;  %s4888_s4 = scalar_lea.vmem %s5478_s0, %s4065_s6  ;;  %v788_v4 = vld [vmem:[%s5479_s23] sm:$0xff] }
  0x29   : > { %846 = vperm.xlu0 %4575, %v789_v2   ;;  %s776_s7 = scalar_lea.vmem %s5480_s18, %s4065_s6  ;;  %s4067_s5 = sshll.u32 %s764_s30, 6  ;;  %v806_v6 = vld [vmem:[%s766_s2] sm:$0x3] }
  0x2a   : > { %v4900_v7 = vld [vmem:[%s4888_s4] sm:$0xff]   ;;  %s4905_s3 = scalar_lea.vmem %s5481_s27, %s4067_s5  ;;  %4204 = vmatpush3.msk.msra.mxu0 %vm853_vm1, %v806_v6  ;;  %v843_v9 = vpack.c.bf16 %v806_v6, %v806_v6  ;;  %s5483_s25 = sld [smem:[#allocation22_spill]] }
  0x2b   : > { %v4908_v8 = vld [vmem:[%s776_s7] sm:$0xff]   ;;  %4206 = vmatmul.mubr.msk.f32.vlgmr.msra.gmra.mxu0 %vm849_vm2, %v788_v4  ;;  %4214 = vmatprep.subr.bf16.mxu0 %v4696_v1  ;;  %v5051_v4 = vld [vmem:[%s4905_s3 + $0x38] sm:$0xff]   ;;  %s5485_s27 = sld [smem:[#allocation24_spill]] }
  0x2c   : > { %s4913_s13 = scalar_lea.vmem %s5482_s1, %s4067_s5  ;;  %4209 = vmatpush3.bf16.msra.mxu1 %v4908_v8  ;;  %4215 = vmatpush3.bf16.msra.mxu0 %v4900_v7  ;;  %v796_v11 = vld [vmem:[#allocation2] sm:$0x1]  ;;  %s5484_s5 = sld [smem:[#allocation23_spill]] }
  0x2d   : > { %4216 = vmatprep.mubr.msk.bf16.mxu0 %vm4697_vm0, %v4696_v1  ;;  %1178 = vperm.xlu0 %4575, %v794_v5   ;;  %v803_v12 = vld [vmem:[%s5439_s20] sm:$0xff]  ;;  %v5054_v5 = vld [vmem:[%s4913_s13 + $0x38] sm:$0xff]   ;;  %s5487_s23 = sld [smem:[#allocation10_spill]] }
  0x2e   : > { %4220 = vmatprep.subr.mxu1 %v4696_v1  ;;  %4225 = vmatprep.subr.mxu0 %v4696_v1  ;;  %v793_v17 = vld [vmem:[%s5429_s10] sm:$0xff]  ;;  %s5489_s30 = sld [smem:[#allocation25_spill]] }
  0x2f   : > { %4211 = vmatmul.mubr.msk.bf16.vlgmr.msra.gmra.mxu1 %vm934_vm3, %v843_v9  ;;  %4217 = vmatmul.mubr.msk.bf16.vlgmr.msra.gmra.mxu0 %vm934_vm3, %v843_v9  ;;  %v791_v18 = vld [vmem:[%s5427_s8] sm:$0xff]  ;;  %v5064_v9 = vld [vmem:[%s4913_s13 + $0x30] sm:$0xff]  }
  0x30   : > { %4222 = vmatprep.mubr.msk.f32.mxu1 %vm4697_vm0, %v4696_v1  ;;  %4227 = vmatprep.mubr.msk.f32.mxu0 %vm4697_vm0, %v4696_v1  ;;  %v798_v23 = vld [vmem:[%s5434_s15] sm:$0xff] }
  0x31   : > { %1418 = vperm.xlu0 %4575, %v805_v10   ;;  %1408 = vperm.xlu1 %4576, %v796_v11   ;;  %v800_v26 = vld [vmem:[%s5436_s17] sm:$0xff]  ;;  %v5070_v10 = vld [vmem:[%s4905_s3 + $0x28] sm:$0xff]  }
  0x32   : > { %v802_v29 = vld [vmem:[%s5438_s19] sm:$0xff]  ;;  %v5074_v11 = vld [vmem:[%s4913_s13 + $0x28] sm:$0xff]  }
  0x33   : > { %v4998_v43 = vld [vmem:[%s5428_s9] sm:$0xff]  ;;  %s4062_s18 = sshll.u32 %s5487_s23, 4 }
  0x34   : > { %v5003_v44 = vld [vmem:[%s5483_s25] sm:$0xff]  ;;  %s5384_s6 = scalar_lea.hbm %s5489_s30, %s4062_s18 }
  0x35   : > { %1330 = vperm.xlu1 %4576, %v803_v12   ;;  %v5015_v49 = vld [vmem:[%s5433_s14] sm:$0xff] }
  0x36   : > { %v5033_v0 = vld [vmem:[%s5431_s12] sm:$0x1] }
  0x37   : > { %v5043_v3 = vld [vmem:[%s5435_s16] sm:$0xff] }
  0x38   : > { %v5080_v12 = vld [vmem:[%s4905_s3 + $0x20] sm:$0xff]  }
  0xa4   : > { %v847_v13 = vpop.permute.xlu0 %846 }
  0xa8   : > { %v1179_v54 = vpop.permute.xlu0 %1178 }
  0xeb   : > { %v923_v14 = vpop.f32.mrf.mxu0 }
  0xec   : > { %v924_v15 = vadd.f32 %v923_v14, %v847_v13  ;;  %v5084_v13 = vld [vmem:[%s4913_s13 + $0x20] sm:$0xff]   ;;  %v5090_v14 = vld [vmem:[%s4905_s3 + $0x18] sm:$0xff]  }
  0xed   : > { %v4207_v16 = vpop.f32.mrf.mxu0 }
  0xee   : > { %4595 = vtanh.f32 %v924_v15  ;;  %v5094_v15 = vld [vmem:[%s4913_s13 + $0x18] sm:$0xff]   ;;  %v5100_v16 = vld [vmem:[%s4905_s3 + $0x10] sm:$0xff]  }
  0xef   : > { %v972_v19 = vpop.f32.mrf.mxu1  ;;  %v1018_v20 = vpop.f32.mrf.mxu0 }
  0xf0   : > { %4221 = vmatpush3.msk.msra.mxu1 %vm853_vm1, %v1018_v20  ;;  %4226 = vmatpush3.msk.msra.mxu0 %vm853_vm1, %v972_v19 }
  0xf1   : > { %v4212_v21 = vpop.f32.mrf.mxu1  ;;  %v4218_v22 = vpop.f32.mrf.mxu0  ;;  %4223 = vmatmul.mubr.msk.f32.vlgmr.msra.gmra.mxu1 %vm849_vm2, %v793_v17  ;;  %4228 = vmatmul.mubr.msk.f32.vlgmr.msra.gmra.mxu0 %vm849_vm2, %v791_v18  ;;  %v5104_v17 = vld [vmem:[%s4913_s13 + $0x10] sm:$0xff]   ;;  %v5110_v18 = vld [vmem:[%s4905_s3 + $0x8] sm:$0xff]  }
  0xf2   : > { %4235 = vmatprep.subr.mxu0 %v4696_v1  ;;  %4230 = vmatprep.subr.mxu1 %v4696_v1  ;;  %v5124_v21 = vld [vmem:[%s4913_s13] sm:$0xff]   ;;  %v1411_v22 = vlaneseq }
  0xf3   : > { %4236 = vmatpush3.msk.msra.mxu0 %vm853_vm1, %v1018_v20  ;;  %v975_v24 = vpop.f32.mrf.mxu1  ;;  %v1021_v25 = vpop.f32.mrf.mxu0  ;;  %4231 = vmatpush3.msk.msra.mxu1 %vm853_vm1, %v972_v19  ;;  %v5114_v19 = vld [vmem:[%s4913_s13 + $0x8] sm:$0xff]   ;;  %v5120_v20 = vld [vmem:[%s4905_s3] sm:$0xff]  }
  0xf4   : > { %4232 = vmatprep.mubr.msk.f32.mxu1 %vm4697_vm0, %v4696_v1  ;;  %4237 = vmatprep.mubr.msk.f32.mxu0 %vm4697_vm0, %v4696_v1  ;;  %v1409_v25 = vpop.permute.xlu1 %1408 }
  0xf5   : > { %v4213_v27 = vpop.f32.mrf.mxu1  ;;  %v4219_v28 = vpop.f32.mrf.mxu0  ;;  %4233 = vmatmul.mubr.msk.f32.vlgmr.msra.gmra.mxu1 %vm849_vm2, %v798_v23  ;;  %4240 = vmatprep.subr.mxu1 %v4696_v1  ;;  %v1412_v23 = vshrl.u32 %v1411_v22, 7 }
  0xf6   : > { %4238 = vmatmul.mubr.msk.f32.vlgmr.msra.gmra.mxu0 %vm849_vm2, %v800_v26  ;;  %4241 = vmatpush3.msk.msra.mxu1 %vm853_vm1, %v806_v6  ;;  %v5060_v6 = vld [vmem:[%s4905_s3 + $0x30] sm:$0xff]   ;;  %s4699_s3 = smov [#allocation3]  }
  0xf7   : > { %4242 = vmatprep.mubr.msk.f32.mxu1 %vm4697_vm0, %v4696_v1  ;;  %4245 = vmatprep.subr.bf16.mxu0 %v4696_v1  ;;  %v5130_v24 = vsub.s32 0, %v1412_v23  ;;  %v5164_v23 = vld [vmem:[%s5485_s27] sm:$0xff]  ;;  %s4638_s13 = sshll.u32 %s4699_s3, 4  ;;  %s4639_s13 = int_to_ptr.vmem [resolvable:$false] %s4638_s13 }
  0xf8   : > { %4251 = vmatprep.subr.bf16.mxu1 %v4696_v1  ;;  %4246 = vmatpush3.bf16.msra.mxu0 %v4908_v8 }
  0xf9   : > { %4243 = vmatmul.mubr.msk.f32.vlgmr.msra.gmra.mxu1 %vm849_vm2, %v802_v29  ;;  %4247 = vmatprep.mubr.msk.bf16.mxu0 %vm4697_vm0, %v4696_v1  ;;  %v5133_v26 = vrot.slane %v1409_v25, %v5130_v24 }
  0xfa   : > { %4252 = vmatpush3.bf16.msra.mxu1 %v4900_v7  ;;  %4253 = vmatprep.mubr.msk.bf16.mxu1 %vm4697_vm0, %v4696_v1 }
  0xfb   : > { %v4977_v30 = vpop.eup %4595  ;;  %4257 = vmatprep.subr.mxu0 %v4696_v1  ;;  %4262 = vmatprep.subr.mxu1 %v4696_v1 }
  0xfc   : > { %v1422_v31 = vpack.c.bf16 %v4977_v30, %v4977_v30 }
  0xfe   : > { %4248 = vmatmul.mubr.msk.bf16.vlgmr.msra.gmra.mxu0 %vm934_vm3, %v1422_v31  ;;  %4254 = vmatmul.mubr.msk.bf16.vlgmr.msra.gmra.mxu1 %vm934_vm3, %v1422_v31 }
  0xff   : > { %4259 = vmatprep.mubr.msk.f32.mxu0 %vm4697_vm0, %v4696_v1  ;;  %4264 = vmatprep.mubr.msk.f32.mxu1 %vm4697_vm0, %v4696_v1 }
 0x1b1   : > { %v1096_v32 = vpop.f32.mrf.mxu1  ;;  %v1172_v33 = vpop.f32.mrf.mxu0 }
 0x1b2   : > { %v1173_v34 = vadd.f32 %v1172_v33, %v1096_v32 }
 0x1b3   : > { %v4224_v35 = vpop.f32.mrf.mxu1  ;;  %v4229_v36 = vpop.f32.mrf.mxu0 }
 0x1b4   : > { %v5025_v57 = vadd.f32 %v1179_v54, %v1173_v34 }
 0x1b5   : > { %v4989_v37 = vpop.f32.mrf.mxu1 }
 0x1b6   : > { %v4991_v38 = vpop.f32.mrf.mxu0 }
 0x1b7   : > { %v4234_v39 = vpop.f32.mrf.mxu1 }
 0x1b8   : > { %v4239_v40 = vpop.f32.mrf.mxu0 }
 0x1b9   : > { %v4993_v41 = vpop.f32.mrf.mxu1 }
 0x1bb   : > { %v4244_v42 = vpop.f32.mrf.mxu1 }
 0x1be   : > { %v1460_v45 = vpop.f32.mrf.mxu0  ;;  %v1500_v46 = vpop.f32.mrf.mxu1 }
 0x1bf   : > { %4258 = vmatpush3.msra.mxu0 %v1500_v46  ;;  %4263 = vmatpush3.msra.mxu1 %v1460_v45 }
 0x1c0   : > { %v4249_v47 = vpop.f32.mrf.mxu0  ;;  %v4255_v48 = vpop.f32.mrf.mxu1  ;;  %4260 = vmatmul.mubr.msk.f32.vlgmr.msra.gmra.mxu0 %vm1506_vm4, %v4998_v43  ;;  %4265 = vmatmul.mubr.msk.f32.vlgmr.msra.gmra.mxu1 %vm1506_vm4, %v5003_v44 }
 0x1c1   : > { %4272 = vmatprep.subr.mxu1 %v4696_v1  ;;  %4274 = vmatprep.mubr.msk.f32.mxu1 %vm4697_vm0, %v4696_v1 }
 0x1c2   : > { %4273 = vmatpush3.msra.mxu1 %v1460_v45  ;;  %v1463_v50 = vpop.f32.mrf.mxu0  ;;  %v1503_v51 = vpop.f32.mrf.mxu1  ;;  %4267 = vmatprep.subr.mxu0 %v4696_v1 }
 0x1c3   : > { %4269 = vmatprep.mubr.msk.f32.mxu0 %vm4697_vm0, %v4696_v1  ;;  %4282 = vmatprep.subr.bf16.mxu1 %v4696_v1  ;;  %v5149_v50 = vld [vmem:[%s5484_s5] sm:$0xff]  ;;  %s4640_s5 = scalar_lea.vmem %s4639_s13, 32 }
 0x1c4   : > { %v4250_v52 = vpop.f32.mrf.mxu0  ;;  %v4256_v53 = vpop.f32.mrf.mxu1  ;;  %4275 = vmatmul.mubr.msk.f32.vlgmr.msra.gmra.mxu1 %vm1506_vm4, %v5015_v49 }
 0x1c5   : > { %4298 = vmatprep.mubr.msk.bf16.mxu1 %vm4697_vm0, %v4696_v1  ;;  %4283 = vmatpush3.bf16.msra.mxu1 %v5051_v4 }
 0x1c6   : > { %4284 = vmatprep.subr.bf16.mxu1 %v4696_v1 }
 0x1c9   : > { %4285 = vmatpush3.bf16.msra.mxu1 %v5060_v6 }
 0x1ca   : > { %4286 = vmatprep.subr.bf16.mxu1 %v4696_v1 }
 0x1cd   : > { %4287 = vmatpush3.bf16.msra.mxu1 %v5070_v10 }
 0x1ce   : > { %4288 = vmatprep.subr.bf16.mxu1 %v4696_v1 }
 0x1d1   : > { %4289 = vmatpush3.bf16.msra.mxu1 %v5080_v12 }
 0x1d2   : > { %4290 = vmatprep.subr.bf16.mxu1 %v4696_v1 }
 0x1d5   : > { %4291 = vmatpush3.bf16.msra.mxu1 %v5090_v14 }
 0x1d6   : > { %4292 = vmatprep.subr.bf16.mxu1 %v4696_v1 }
 0x1d9   : > { %4293 = vmatpush3.bf16.msra.mxu1 %v5100_v16 }
 0x1da   : > { %4294 = vmatprep.subr.bf16.mxu1 %v4696_v1 }
 0x1dd   : > { %4295 = vmatpush3.bf16.msra.mxu1 %v5110_v18 }
 0x1de   : > { %4296 = vmatprep.subr.bf16.mxu1 %v4696_v1 }
 0x1e1   : > { %4297 = vmatpush3.bf16.msra.mxu1 %v5120_v20 }
 0x1e2   : > { %4322 = vmatprep.subr.mxu1 %v4696_v1 }
 0x280   : > { %v1576_v55 = vpop.f32.mrf.mxu0  ;;  %v1649_v56 = vpop.f32.mrf.mxu1 }
 0x281   : > { %v1650_v58 = vadd.f32 %v1649_v56, %v1576_v55  ;;  %v1331_v56 = vpop.permute.xlu1 %1330 }
 0x282   : > { %v4261_v59 = vpop.f32.mrf.mxu0  ;;  %v4266_v60 = vpop.f32.mrf.mxu1 }
 0x283   : > { %v1653_v61 = vadd.f32 %v1650_v58, %v5025_v57 }
 0x284   : > { %v5028_v62 = vpop.f32.mrf.mxu1 }
 0x285   : > { %4597 = vtanh.f32 %v1653_v61  ;;  %v1804_v39 = vadd.f32 %v5028_v62, %v4989_v37  ;;  %v5158_v62 = vadd.f32 %v4993_v41, %v1331_v56  ;;  %v5173_v41 = vpop.permute.xlu0 %1418 }
 0x286   : > { %v4276_v63 = vpop.f32.mrf.mxu1 }
 0x292   : > { %v4598_v2 = vpop.eup %4597 }
 0x293   : > { %4268 = vmatpush3.msra.mxu0 %v4598_v2 }
 0x294   : > { %4270 = vmatmul.mubr.msk.f32.vlgmr.msra.gmra.mxu0 %vm1506_vm4, %v5033_v0  ;;  %4277 = vmatprep.subr.mxu0 %v4696_v1 }
 0x295   : > { %4278 = vmatpush3.msra.mxu0 %v1500_v46  ;;  %4279 = vmatprep.mubr.msk.f32.mxu0 %vm4697_vm0, %v4696_v1 }
 0x296   : > { %4302 = vmatprep.subr.bf16.mxu0 %v4696_v1 }
 0x298   : > { %4280 = vmatmul.mubr.msk.f32.vlgmr.msra.gmra.mxu0 %vm1506_vm4, %v5043_v3 }
 0x299   : > { %4318 = vmatprep.mubr.msk.bf16.mxu0 %vm4697_vm0, %v4696_v1  ;;  %4303 = vmatpush3.bf16.msra.mxu0 %v5054_v5 }
 0x29a   : > { %4304 = vmatprep.subr.bf16.mxu0 %v4696_v1 }
 0x29d   : > { %4305 = vmatpush3.bf16.msra.mxu0 %v5064_v9 }
 0x29e   : > { %4306 = vmatprep.subr.bf16.mxu0 %v4696_v1 }
 0x2a1   : > { %4307 = vmatpush3.bf16.msra.mxu0 %v5074_v11 }
 0x2a2   : > { %4308 = vmatprep.subr.bf16.mxu0 %v4696_v1 }
 0x2a5   : > { %4309 = vmatpush3.bf16.msra.mxu0 %v5084_v13 }
 0x2a6   : > { %4310 = vmatprep.subr.bf16.mxu0 %v4696_v1 }
 0x2a9   : > { %4311 = vmatpush3.bf16.msra.mxu0 %v5094_v15 }
 0x2aa   : > { %4312 = vmatprep.subr.bf16.mxu0 %v4696_v1 }
 0x2ad   : > { %4313 = vmatpush3.bf16.msra.mxu0 %v5104_v17 }
 0x2ae   : > { %4314 = vmatprep.subr.bf16.mxu0 %v4696_v1 }
 0x2b1   : > { %4315 = vmatpush3.bf16.msra.mxu0 %v5114_v19 }
 0x2b2   : > { %4316 = vmatprep.subr.bf16.mxu0 %v4696_v1 }
 0x2b5   : > { %4317 = vmatpush3.bf16.msra.mxu0 %v5124_v21 }
 0x2b6   : > { %4327 = vmatprep.subr.mxu0 %v4696_v1 }
 0x354   : > { %v1724_v27 = vpop.f32.mrf.mxu0 }
 0x355   : > { %v1725_v28 = vadd.f32 %v1724_v27, %v5133_v26 }
 0x356   : > { %v4271_v29 = vpop.f32.mrf.mxu0 }
 0x357   : > { %v4015_v31 = vmul.f32 -1.442695, %v1725_v28 }
 0x358   : > { %v1876_v32 = vpop.f32.mrf.mxu0 }
 0x359   : > { %4599 = vpow2.f32 %v4015_v31  ;;  %v1877_v40 = vadd.f32 %v1876_v32, %v4991_v38 }
 0x35a   : > { %v4281_v33 = vpop.f32.mrf.mxu0 }
 0x366   : > { %v4600_v34 = vpop.eup %4599 }
 0x367   : > { %v1731_v35 = vadd.f32 1.0, %v4600_v34 }
 0x369   : > { %4601 = vrcp.f32 %v1731_v35 }
 0x376   : > { %v4602_v36 = vpop.eup %4601 }
 0x377   : > { %v1883_v42 = vrot.slane %v4602_v36, %v5130_v24 }
 0x379   : > { %v1884_v45 = vmul.f32 %v1883_v42, %v1804_v39  ;;  %v1886_v46 = vmul.f32 %v1883_v42, %v1877_v40 }
 0x37b   : > { %v1885_v47 = vpack.c.bf16 %v1884_v45, %v1884_v45  ;;  %v1887_v48 = vpack.c.bf16 %v1886_v46, %v1886_v46 }
 0x37d   : > { %4299 = vmatmul.mubr.bf16.vlgmr.msra.gmra.mxu1 %v1887_v48  ;;  %4319 = vmatmul.mubr.bf16.vlgmr.msra.gmra.mxu0 %v1885_v47 }
 0x37e   : > { %4323 = vmatpush3.msra.mxu1 %v4977_v30  ;;  %4324 = vmatprep.mubr.msk.f32.mxu1 %vm4697_vm0, %v4696_v1 }
 0x37f   : > { %4329 = vmatprep.mubr.msk.f32.mxu0 %vm4697_vm0, %v4696_v1  ;;  %4332 = vmatprep.subr.bf16.mxu1 %v4696_v1 }
 0x385   : > { %4325 = vmatmul.mubr.msk.f32.vlgmr.msra.gmra.mxu1 %vm1506_vm4, %v5149_v50 }
 0x386   : > { %4333 = vmatpush3.bf16.msra.mxu1 %v4908_v8  ;;  %4334 = vmatprep.mubr.msk.bf16.mxu1 %vm4697_vm0, %v4696_v1 }
 0x387   : > { %4344 = vmatprep.subr.mxu1 %v4696_v1 }
 0x43d   : > { %v1970_v30 = vpop.f32.mrf.mxu1  ;;  %v2058_v51 = vpop.f32.mrf.mxu0 }
 0x43e   : > { %v2059_v60 = vadd.f32 %v2058_v51, %v1970_v30 }
 0x43f   : > { %v4300_v52 = vpop.f32.mrf.mxu1  ;;  %v4320_v53 = vpop.f32.mrf.mxu0 }
 0x441   : > { %v1973_v54 = vpop.f32.mrf.mxu1  ;;  %v2061_v55 = vpop.f32.mrf.mxu0 }
 0x443   : > { %v4301_v58 = vpop.f32.mrf.mxu1  ;;  %v4321_v59 = vpop.f32.mrf.mxu0 }
 0x445   : > { %v2133_v61 = vpop.f32.mrf.mxu1 }
 0x446   : > { %v2137_v63 = vadd.f32 %v2133_v61, %v2059_v60 }
 0x447   : > { %v4326_v2 = vpop.f32.mrf.mxu1 }
 0x448   : > { %v2138_v22 = vadd.f32 %v2137_v63, %v5158_v62 }
 0x44a   : > { %4603 = vtanh.f32 %v2138_v22 }
 0x457   : > { %v4604_v25 = vpop.eup %4603 }
 0x458   : > { %4328 = vmatpush3.msra.mxu0 %v4604_v25 }
 0x459   : > { %4330 = vmatmul.mubr.msk.f32.vlgmr.msra.gmra.mxu0 %vm1506_vm4, %v5164_v23  ;;  %4338 = vmatprep.subr.bf16.mxu0 %v4696_v1 }
 0x45a   : > { %4339 = vmatpush3.bf16.msra.mxu0 %v4900_v7  ;;  %4340 = vmatprep.mubr.msk.bf16.mxu0 %vm4697_vm0, %v4696_v1 }
 0x45b   : > { %4349 = vmatprep.subr.mxu0 %v4696_v1 }
 0x519   : > { %v2209_v27 = vpop.f32.mrf.mxu0 }
 0x51a   : > { %v2210_v28 = vadd.f32 %v2209_v27, %v5173_v41 }
 0x51b   : > { %v4331_v29 = vpop.f32.mrf.mxu0 }
 0x51c   : > { %4605 = vtanh.f32 %v2210_v28 }
 0x529   : > { %v5176_v31 = vpop.eup %4605 }
 0x52a   : > { %v2214_v32 = vpack.c.bf16 %v5176_v31, %v5176_v31 }
 0x52c   : > { %4335 = vmatmul.mubr.msk.bf16.vlgmr.msra.gmra.mxu1 %vm934_vm3, %v2214_v32  ;;  %4341 = vmatmul.mubr.msk.bf16.vlgmr.msra.gmra.mxu0 %vm934_vm3, %v2214_v32 }
 0x52d   : > { %4346 = vmatprep.mubr.msk.f32.mxu1 %vm4697_vm0, %v4696_v1  ;;  %4351 = vmatprep.mubr.msk.f32.mxu0 %vm4697_vm0, %v4696_v1 }
 0x5ec   : > { %v2252_v33 = vpop.f32.mrf.mxu1  ;;  %v2292_v34 = vpop.f32.mrf.mxu0 }
 0x5ed   : > { %4345 = vmatpush3.msra.mxu1 %v2292_v34  ;;  %4350 = vmatpush3.msra.mxu0 %v2252_v33 }
 0x5ee   : > { %v4336_v35 = vpop.f32.mrf.mxu1  ;;  %v4342_v36 = vpop.f32.mrf.mxu0  ;;  %4347 = vmatmul.mubr.msk.f32.vlgmr.msra.gmra.mxu1 %vm1506_vm4, %v4998_v43  ;;  %4352 = vmatmul.mubr.msk.f32.vlgmr.msra.gmra.mxu0 %vm1506_vm4, %v5003_v44 }
 0x5ef   : > { %4359 = vmatprep.subr.mxu0 %v4696_v1  ;;  %4361 = vmatprep.mubr.msk.f32.mxu0 %vm4697_vm0, %v4696_v1 }
 0x5f0   : > { %4360 = vmatpush3.msra.mxu0 %v2252_v33  ;;  %v2255_v39 = vpop.f32.mrf.mxu1  ;;  %v2295_v40 = vpop.f32.mrf.mxu0  ;;  %4354 = vmatprep.subr.mxu1 %v4696_v1 }
 0x5f1   : > { %4356 = vmatprep.mubr.msk.f32.mxu1 %vm4697_vm0, %v4696_v1  ;;  %4369 = vmatprep.subr.bf16.mxu0 %v4696_v1 }
 0x5f2   : > { %v4337_v42 = vpop.f32.mrf.mxu1  ;;  %v4343_v45 = vpop.f32.mrf.mxu0  ;;  %4362 = vmatmul.mubr.msk.f32.vlgmr.msra.gmra.mxu0 %vm1506_vm4, %v5015_v49 }
 0x5f3   : > { %4370 = vmatpush3.bf16.msra.mxu0 %v5051_v4  ;;  %4385 = vmatprep.mubr.msk.bf16.mxu0 %vm4697_vm0, %v4696_v1 }
 0x5f4   : > { %4371 = vmatprep.subr.bf16.mxu0 %v4696_v1 }
 0x5f7   : > { %4372 = vmatpush3.bf16.msra.mxu0 %v5060_v6 }
 0x5f8   : > { %4373 = vmatprep.subr.bf16.mxu0 %v4696_v1 }
 0x5fb   : > { %4374 = vmatpush3.bf16.msra.mxu0 %v5070_v10 }
 0x5fc   : > { %4375 = vmatprep.subr.bf16.mxu0 %v4696_v1 }
 0x5ff   : > { %4376 = vmatpush3.bf16.msra.mxu0 %v5080_v12 }
 0x600   : > { %4377 = vmatprep.subr.bf16.mxu0 %v4696_v1 }
 0x603   : > { %4378 = vmatpush3.bf16.msra.mxu0 %v5090_v14 }
 0x604   : > { %4379 = vmatprep.subr.bf16.mxu0 %v4696_v1 }
 0x607   : > { %4380 = vmatpush3.bf16.msra.mxu0 %v5100_v16 }
 0x608   : > { %4381 = vmatprep.subr.bf16.mxu0 %v4696_v1 }
 0x60b   : > { %4382 = vmatpush3.bf16.msra.mxu0 %v5110_v18 }
 0x60c   : > { %4383 = vmatprep.subr.bf16.mxu0 %v4696_v1 }
 0x60f   : > { %4384 = vmatpush3.bf16.msra.mxu0 %v5120_v20 }
 0x610   : > { %4409 = vmatprep.subr.mxu0 %v4696_v1 }
 0x6ae   : > { %v2364_v46 = vpop.f32.mrf.mxu1  ;;  %v2434_v47 = vpop.f32.mrf.mxu0 }
 0x6af   : > { %v2435_v48 = vadd.f32 %v2434_v47, %v2364_v46 }
 0x6b0   : > { %v4348_v30 = vpop.f32.mrf.mxu1  ;;  %v4353_v51 = vpop.f32.mrf.mxu0 }
 0x6b1   : > { %v2438_v52 = vadd.f32 %v2435_v48, %v5025_v57 }
 0x6b2   : > { %v2582_v53 = vpop.f32.mrf.mxu0 }
 0x6b3   : > { %4607 = vtanh.f32 %v2438_v52  ;;  %v2583_v27 = vadd.f32 %v2582_v53, %v4989_v37 }
 0x6b4   : > { %v4363_v54 = vpop.f32.mrf.mxu0 }
 0x6c0   : > { %v4608_v55 = vpop.eup %4607 }
 0x6c1   : > { %4355 = vmatpush3.msra.mxu1 %v4608_v55 }
 0x6c2   : > { %4357 = vmatmul.mubr.msk.f32.vlgmr.msra.gmra.mxu1 %vm1506_vm4, %v5033_v0  ;;  %4364 = vmatprep.subr.mxu1 %v4696_v1 }
 0x6c3   : > { %4365 = vmatpush3.msra.mxu1 %v2292_v34  ;;  %4366 = vmatprep.mubr.msk.f32.mxu1 %vm4697_vm0, %v4696_v1 }
 0x6c4   : > { %4389 = vmatprep.subr.bf16.mxu1 %v4696_v1 }
 0x6c6   : > { %4367 = vmatmul.mubr.msk.f32.vlgmr.msra.gmra.mxu1 %vm1506_vm4, %v5043_v3 }
 0x6c7   : > { %4390 = vmatpush3.bf16.msra.mxu1 %v5054_v5  ;;  %4405 = vmatprep.mubr.msk.bf16.mxu1 %vm4697_vm0, %v4696_v1 }
 0x6c8   : > { %4391 = vmatprep.subr.bf16.mxu1 %v4696_v1 }
 0x6cb   : > { %4392 = vmatpush3.bf16.msra.mxu1 %v5064_v9 }
 0x6cc   : > { %4393 = vmatprep.subr.bf16.mxu1 %v4696_v1 }
 0x6cf   : > { %4394 = vmatpush3.bf16.msra.mxu1 %v5074_v11 }
 0x6d0   : > { %4395 = vmatprep.subr.bf16.mxu1 %v4696_v1 }
 0x6d3   : > { %4396 = vmatpush3.bf16.msra.mxu1 %v5084_v13 }
 0x6d4   : > { %4397 = vmatprep.subr.bf16.mxu1 %v4696_v1 }
 0x6d7   : > { %4398 = vmatpush3.bf16.msra.mxu1 %v5094_v15 }
 0x6d8   : > { %4399 = vmatprep.subr.bf16.mxu1 %v4696_v1 }
 0x6db   : > { %4400 = vmatpush3.bf16.msra.mxu1 %v5104_v17 }
 0x6dc   : > { %4401 = vmatprep.subr.bf16.mxu1 %v4696_v1 }
 0x6df   : > { %4402 = vmatpush3.bf16.msra.mxu1 %v5114_v19 }
 0x6e0   : > { %4403 = vmatprep.subr.bf16.mxu1 %v4696_v1 }
 0x6e3   : > { %4404 = vmatpush3.bf16.msra.mxu1 %v5124_v21 }
 0x6e4   : > { %4414 = vmatprep.subr.mxu1 %v4696_v1 }
 0x782   : > { %v2506_v56 = vpop.f32.mrf.mxu1 }
 0x783   : > { %v2507_v58 = vadd.f32 %v2506_v56, %v5133_v26 }
 0x784   : > { %v4358_v59 = vpop.f32.mrf.mxu1 }
 0x785   : > { %v4041_v60 = vmul.f32 -1.442695, %v2507_v58 }
 0x786   : > { %v2652_v61 = vpop.f32.mrf.mxu1 }
 0x787   : > { %4609 = vpow2.f32 %v4041_v60  ;;  %v2653_v28 = vadd.f32 %v2652_v61, %v4991_v38 }
 0x788   : > { %v4368_v63 = vpop.f32.mrf.mxu1 }
 0x794   : > { %v4610_v2 = vpop.eup %4609 }
 0x795   : > { %v2513_v22 = vadd.f32 1.0, %v4610_v2 }
 0x797   : > { %4611 = vrcp.f32 %v2513_v22 }
 0x7a4   : > { %v4612_v25 = vpop.eup %4611 }
 0x7a5   : > { %v2659_v29 = vrot.slane %v4612_v25, %v5130_v24 }
 0x7a7   : > { %v2660_v32 = vmul.f32 %v2659_v29, %v2583_v27  ;;  %v2662_v33 = vmul.f32 %v2659_v29, %v2653_v28 }
 0x7a9   : > { %v2661_v34 = vpack.c.bf16 %v2660_v32, %v2660_v32  ;;  %v2663_v35 = vpack.c.bf16 %v2662_v33, %v2662_v33 }
 0x7ab   : > { %4386 = vmatmul.mubr.bf16.vlgmr.msra.gmra.mxu0 %v2663_v35  ;;  %4406 = vmatmul.mubr.bf16.vlgmr.msra.gmra.mxu1 %v2661_v34 }
 0x7ac   : > { %4410 = vmatpush3.msra.mxu0 %v5176_v31  ;;  %4411 = vmatprep.mubr.msk.f32.mxu0 %vm4697_vm0, %v4696_v1 }
 0x7ad   : > { %4416 = vmatprep.mubr.msk.f32.mxu1 %vm4697_vm0, %v4696_v1  ;;  %4419 = vmatprep.subr.bf16.mxu0 %v4696_v1 }
 0x7b3   : > { %4412 = vmatmul.mubr.msk.f32.vlgmr.msra.gmra.mxu0 %vm1506_vm4, %v5149_v50 }
 0x7b4   : > { %4420 = vmatpush3.bf16.msra.mxu0 %v4908_v8  ;;  %4421 = vmatprep.mubr.msk.bf16.mxu0 %vm4697_vm0, %v4696_v1 }
 0x7b5   : > { %4431 = vmatprep.subr.mxu0 %v4696_v1 }
 0x86b   : > { %v2698_v36 = vpop.f32.mrf.mxu0  ;;  %v2738_v31 = vpop.f32.mrf.mxu1 }
 0x86c   : > { %v2739_v48 = vadd.f32 %v2738_v31, %v2698_v36 }
 0x86d   : > { %v4387_v39 = vpop.f32.mrf.mxu0  ;;  %v4407_v40 = vpop.f32.mrf.mxu1 }
 0x86f   : > { %v2701_v42 = vpop.f32.mrf.mxu0  ;;  %v2741_v45 = vpop.f32.mrf.mxu1 }
 0x871   : > { %v4388_v46 = vpop.f32.mrf.mxu0  ;;  %v4408_v47 = vpop.f32.mrf.mxu1 }
 0x873   : > { %v2810_v30 = vpop.f32.mrf.mxu0 }
 0x874   : > { %v2814_v51 = vadd.f32 %v2810_v30, %v2739_v48 }
 0x875   : > { %v4413_v52 = vpop.f32.mrf.mxu0 }
 0x876   : > { %v2815_v53 = vadd.f32 %v2814_v51, %v5158_v62  ;;  %v4633_v52 = vld [vmem:[%s4888_s4] sm:$0xff]   ;;  %s5486_s4 = sld [smem:[#allocation7_spill]] }
 0x878   : > { %4613 = vtanh.f32 %v2815_v53 }
 0x87c   : > { %s761_s1 = sand.u32 1, %s5486_s4  }
 0x87d   : > { %s762_s21 = scalar_lea.vmem [#allocation3], %s761_s1  ;;  %s3866_s0 = scalar_lea.sflag [#allocation4], %s761_s1 }
 0x87e   : > { %s3878_s25 = sshll.u32 %s762_s21, 4  ;;  %s3879_s25 = int_to_ptr.vmem [resolvable:$true] %s3878_s25 }
 0x87f   : > { %s4634_s7 = scalar_lea.vmem %s3879_s25, 16  ;;  %p4641_p0 = scmp.lt.s32.totalorder %s3879_s25, %s4639_s13 }
 0x880   : > { %p4635_p11 = scmp.ne.s32.totalorder %s3879_s25, %s4634_s7  ;;  %p4642_p1 = scmp.lt.s32.totalorder %s4640_s5, %s4634_s7 }
 0x882   : > { %p4636_p12 = pnand %p4635_p11, %p4861_p5  ;;  %p4643_p2 = por %p4642_p1, %p4641_p0 }
 0x884   : > { %p4637_p13 = pneg %p4636_p12 }
 0x885   : > { %v4614_v54 = vpop.eup %4613 }
 0x886   : > { %4415 = vmatpush3.msra.mxu1 %v4614_v54  ;;  %p4644_p3 = pnand %p4643_p2, %p4637_p13 }
 0x887   : > { %4417 = vmatmul.mubr.msk.f32.vlgmr.msra.gmra.mxu1 %vm1506_vm4, %v5164_v23  ;;  %4425 = vmatprep.subr.bf16.mxu1 %v4696_v1 }
 0x888   : > { %4426 = vmatpush3.bf16.msra.mxu1 %v4900_v7  ;;  %4427 = vmatprep.mubr.msk.bf16.mxu1 %vm4697_vm0, %v4696_v1 }
 0x889   : > { %4436 = vmatprep.subr.mxu1 %v4696_v1 }
 0x947   : > { %v2883_v55 = vpop.f32.mrf.mxu1 }
 0x948   : > { %v2884_v56 = vadd.f32 %v2883_v55, %v5173_v41 }
 0x949   : > { %v4418_v58 = vpop.f32.mrf.mxu1 }
 0x94a   : > { %4615 = vtanh.f32 %v2884_v56 }
 0x957   : > { %v5269_v59 = vpop.eup %4615 }
 0x958   : > { %v2888_v60 = vpack.c.bf16 %v5269_v59, %v5269_v59 }
 0x95a   : > { %4422 = vmatmul.mubr.msk.bf16.vlgmr.msra.gmra.mxu0 %vm934_vm3, %v2888_v60  ;;  %4428 = vmatmul.mubr.msk.bf16.vlgmr.msra.gmra.mxu1 %vm934_vm3, %v2888_v60 }
 0x95b   : > { %4433 = vmatprep.mubr.msk.f32.mxu0 %vm4697_vm0, %v4696_v1  ;;  %4438 = vmatprep.mubr.msk.f32.mxu1 %vm4697_vm0, %v4696_v1 }
 0xa1a   : > { %v2926_v7 = vpop.f32.mrf.mxu0  ;;  %v2966_v61 = vpop.f32.mrf.mxu1 }
 0xa1b   : > { %4432 = vmatpush3.msra.mxu0 %v2966_v61  ;;  %4437 = vmatpush3.msra.mxu1 %v2926_v7 }
 0xa1c   : > { %v4423_v63 = vpop.f32.mrf.mxu0  ;;  %v4429_v2 = vpop.f32.mrf.mxu1  ;;  %4434 = vmatmul.mubr.msk.f32.vlgmr.msra.gmra.mxu0 %vm1506_vm4, %v4998_v43  ;;  %4439 = vmatmul.mubr.msk.f32.vlgmr.msra.gmra.mxu1 %vm1506_vm4, %v5003_v44 }
 0xa1d   : > { %4446 = vmatprep.subr.mxu1 %v4696_v1  ;;  %4448 = vmatprep.mubr.msk.f32.mxu1 %vm4697_vm0, %v4696_v1 }
 0xa1e   : > { %4447 = vmatpush3.msra.mxu1 %v2926_v7  ;;  %v2929_v22 = vpop.f32.mrf.mxu0  ;;  %v2969_v25 = vpop.f32.mrf.mxu1  ;;  %4441 = vmatprep.subr.mxu0 %v4696_v1 }
 0xa1f   : > { %4443 = vmatprep.mubr.msk.f32.mxu0 %vm4697_vm0, %v4696_v1  ;;  %4456 = vmatprep.subr.bf16.mxu1 %v4696_v1 }
 0xa20   : > { %v4424_v27 = vpop.f32.mrf.mxu0  ;;  %v4430_v28 = vpop.f32.mrf.mxu1  ;;  %4449 = vmatmul.mubr.msk.f32.vlgmr.msra.gmra.mxu1 %vm1506_vm4, %v5015_v49 }
 0xa21   : > { %4457 = vmatpush3.bf16.msra.mxu1 %v5051_v4  ;;  %4472 = vmatprep.mubr.msk.bf16.mxu1 %vm4697_vm0, %v4696_v1 }
 0xa22   : > { %4458 = vmatprep.subr.bf16.mxu1 %v4696_v1 }
 0xa25   : > { %4459 = vmatpush3.bf16.msra.mxu1 %v5060_v6 }
 0xa26   : > { %4460 = vmatprep.subr.bf16.mxu1 %v4696_v1 }
 0xa29   : > { %4461 = vmatpush3.bf16.msra.mxu1 %v5070_v10 }
 0xa2a   : > { %4462 = vmatprep.subr.bf16.mxu1 %v4696_v1 }
 0xa2d   : > { %4463 = vmatpush3.bf16.msra.mxu1 %v5080_v12 }
 0xa2e   : > { %4464 = vmatprep.subr.bf16.mxu1 %v4696_v1 }
 0xa31   : > { %4465 = vmatpush3.bf16.msra.mxu1 %v5090_v14 }
 0xa32   : > { %4466 = vmatprep.subr.bf16.mxu1 %v4696_v1 }
 0xa35   : > { %4467 = vmatpush3.bf16.msra.mxu1 %v5100_v16 }
 0xa36   : > { %4468 = vmatprep.subr.bf16.mxu1 %v4696_v1 }
 0xa39   : > { %4469 = vmatpush3.bf16.msra.mxu1 %v5110_v18 }
 0xa3a   : > { %4470 = vmatprep.subr.bf16.mxu1 %v4696_v1 }
 0xa3d   : > { %4471 = vmatpush3.bf16.msra.mxu1 %v5120_v20 }
 0xa3e   : > { %4496 = vmatprep.subr.mxu1 %v4696_v1 }
 0xadc   : > { %v3038_v49 = vpop.f32.mrf.mxu0  ;;  %v3108_v4 = vpop.f32.mrf.mxu1 }
 0xadd   : > { %v3109_v6 = vadd.f32 %v3108_v4, %v3038_v49 }
 0xade   : > { %v4435_v10 = vpop.f32.mrf.mxu0  ;;  %v4440_v12 = vpop.f32.mrf.mxu1 }
 0xadf   : > { %v3112_v14 = vadd.f32 %v3109_v6, %v5025_v57 }
 0xae0   : > { %v3256_v29 = vpop.f32.mrf.mxu1 }
 0xae1   : > { %4617 = vtanh.f32 %v3112_v14 }
 0xae2   : > { %v4450_v16 = vpop.f32.mrf.mxu1 }
 0xaee   : > { %v4618_v32 = vpop.eup %4617 }
 0xaef   : > { %4442 = vmatpush3.msra.mxu0 %v4618_v32 }
 0xaf0   : > { %4444 = vmatmul.mubr.msk.f32.vlgmr.msra.gmra.mxu0 %vm1506_vm4, %v5033_v0  ;;  %4451 = vmatprep.subr.mxu0 %v4696_v1 }
 0xaf1   : > { %4452 = vmatpush3.msra.mxu0 %v2966_v61  ;;  %4453 = vmatprep.mubr.msk.f32.mxu0 %vm4697_vm0, %v4696_v1 }
 0xaf2   : > { %4476 = vmatprep.subr.bf16.mxu0 %v4696_v1 }
 0xaf4   : > { %4454 = vmatmul.mubr.msk.f32.vlgmr.msra.gmra.mxu0 %vm1506_vm4, %v5043_v3 }
 0xaf5   : > { %4477 = vmatpush3.bf16.msra.mxu0 %v5054_v5  ;;  %4492 = vmatprep.mubr.msk.bf16.mxu0 %vm4697_vm0, %v4696_v1 }
 0xaf6   : > { %4478 = vmatprep.subr.bf16.mxu0 %v4696_v1 }
 0xaf9   : > { %4479 = vmatpush3.bf16.msra.mxu0 %v5064_v9 }
 0xafa   : > { %4480 = vmatprep.subr.bf16.mxu0 %v4696_v1 }
 0xafd   : > { %4481 = vmatpush3.bf16.msra.mxu0 %v5074_v11 }
 0xafe   : > { %4482 = vmatprep.subr.bf16.mxu0 %v4696_v1 }
 0xb01   : > { %4483 = vmatpush3.bf16.msra.mxu0 %v5084_v13 }
 0xb02   : > { %4484 = vmatprep.subr.bf16.mxu0 %v4696_v1 }
 0xb05   : > { %4485 = vmatpush3.bf16.msra.mxu0 %v5094_v15 }
 0xb06   : > { %4486 = vmatprep.subr.bf16.mxu0 %v4696_v1 }
 0xb09   : > { %4487 = vmatpush3.bf16.msra.mxu0 %v5104_v17 }
 0xb0a   : > { %4488 = vmatprep.subr.bf16.mxu0 %v4696_v1 }
 0xb0d   : > { %4489 = vmatpush3.bf16.msra.mxu0 %v5114_v19  ;;  %v3257_v19 = vadd.f32 %v3256_v29, %v4989_v37 }
 0xb0e   : > { %4490 = vmatprep.subr.bf16.mxu0 %v4696_v1 }
 0xb11   : > { %4491 = vmatpush3.bf16.msra.mxu0 %v5124_v21 }
 0xb12   : > { %4501 = vmatprep.subr.mxu0 %v4696_v1 }
 0xbb0   : > { %v3180_v3 = vpop.f32.mrf.mxu0 }
 0xbb1   : > { %v3181_v5 = vadd.f32 %v3180_v3, %v5133_v26 }
 0xbb2   : > { %v4445_v9 = vpop.f32.mrf.mxu0 }
 0xbb3   : > { %v4051_v11 = vmul.f32 -1.442695, %v3181_v5 }
 0xbb4   : > { %v3326_v13 = vpop.f32.mrf.mxu0 }
 0xbb5   : > { %4619 = vpow2.f32 %v4051_v11  ;;  %v3327_v33 = vadd.f32 %v3326_v13, %v4991_v38 }
 0xbb6   : > { %v4455_v15 = vpop.f32.mrf.mxu0 }
 0xbc2   : > { %v4620_v18 = vpop.eup %4619 }
 0xbc3   : > { %v3187_v17 = vadd.f32 1.0, %v4620_v18 }
 0xbc5   : > { %4621 = vrcp.f32 %v3187_v17 }
 0xbd2   : > { %v4622_v20 = vpop.eup %4621 }
 0xbd3   : > { %v3333_v21 = vrot.slane %v4622_v20, %v5130_v24 }
 0xbd5   : > { %v3334_v34 = vmul.f32 %v3333_v21, %v3257_v19  ;;  %v3336_v35 = vmul.f32 %v3333_v21, %v3327_v33 }
 0xbd7   : > { %v3335_v36 = vpack.c.bf16 %v3334_v34, %v3334_v34  ;;  %v3337_v31 = vpack.c.bf16 %v3336_v35, %v3336_v35 }
 0xbd9   : > { %4473 = vmatmul.mubr.bf16.vlgmr.msra.gmra.mxu1 %v3337_v31  ;;  %4493 = vmatmul.mubr.bf16.vlgmr.msra.gmra.mxu0 %v3335_v36 }
 0xbda   : > { %4497 = vmatpush3.msra.mxu1 %v5269_v59  ;;  %4498 = vmatprep.mubr.msk.f32.mxu1 %vm4697_vm0, %v4696_v1 }
 0xbdb   : > { %4503 = vmatprep.mubr.msk.f32.mxu0 %vm4697_vm0, %v4696_v1  ;;  %4506 = vmatprep.subr.bf16.mxu1 %v4696_v1 }
 0xbe1   : > { %4499 = vmatmul.mubr.msk.f32.vlgmr.msra.gmra.mxu1 %vm1506_vm4, %v5149_v50 }
 0xbe2   : > { %4507 = vmatpush3.bf16.msra.mxu1 %v4908_v8  ;;  %4508 = vmatprep.mubr.msk.bf16.mxu1 %vm4697_vm0, %v4696_v1 }
 0xbe3   : > { %4518 = vmatprep.subr.mxu1 %v4696_v1 }
 0xc99   : > { %v3372_v37 = vpop.f32.mrf.mxu1  ;;  %v3412_v38 = vpop.f32.mrf.mxu0 }
 0xc9a   : > { %v3413_v47 = vadd.f32 %v3412_v38, %v3372_v37 }
 0xc9b   : > { %v4474_v24 = vpop.f32.mrf.mxu1  ;;  %v4494_v39 = vpop.f32.mrf.mxu0 }
 0xc9d   : > { %v3375_v40 = vpop.f32.mrf.mxu1  ;;  %v3415_v42 = vpop.f32.mrf.mxu0 }
 0xc9f   : > { %v4475_v45 = vpop.f32.mrf.mxu1  ;;  %v4495_v46 = vpop.f32.mrf.mxu0 }
 0xca1   : > { %v3484_v48 = vpop.f32.mrf.mxu1 }
 0xca2   : > { %v3488_v30 = vadd.f32 %v3484_v48, %v3413_v47 }
 0xca3   : > { %v4500_v50 = vpop.f32.mrf.mxu1 }
 0xca4   : > { %v3489_v8 = vadd.f32 %v3488_v30, %v5158_v62 }
 0xca6   : > { %4623 = vtanh.f32 %v3489_v8 }
 0xcb3   : > { %v4624_v51 = vpop.eup %4623 }
 0xcb4   : > { %4502 = vmatpush3.msra.mxu0 %v4624_v51 }
 0xcb5   : > { %4504 = vmatmul.mubr.msk.f32.vlgmr.msra.gmra.mxu0 %vm1506_vm4, %v5164_v23  ;;  %4512 = vmatprep.subr.bf16.mxu0 %v4696_v1 }
 0xcb6   : > { %4513 = vmatpush3.bf16.msra.mxu0 %v4633_v52  ;;  %4514 = vmatprep.mubr.msk.bf16.mxu0 %vm4697_vm0, %v4696_v1 }
 0xcb7   : > { %4523 = vmatprep.subr.mxu0 %v4696_v1 }
 0xd75   : > { %v3557_v53 = vpop.f32.mrf.mxu0 }
 0xd76   : > { %v3558_v54 = vadd.f32 %v3557_v53, %v5173_v41 }
 0xd77   : > { %v4505_v55 = vpop.f32.mrf.mxu0 }
 0xd78   : > { %4625 = vtanh.f32 %v3558_v54 }
 0xd85   : > { %v4626_v62 = vpop.eup %4625 }
 0xd86   : > { %v3562_v56 = vpack.c.bf16 %v4626_v62, %v4626_v62 }
 0xd88   : > { %4509 = vmatmul.mubr.msk.bf16.vlgmr.msra.gmra.mxu1 %vm934_vm3, %v3562_v56  ;;  %4515 = vmatmul.mubr.msk.bf16.vlgmr.msra.gmra.mxu0 %vm934_vm3, %v3562_v56 }
 0xd89   : > { %4520 = vmatprep.mubr.msk.f32.mxu1 %vm4697_vm0, %v4696_v1  ;;  %4525 = vmatprep.mubr.msk.f32.mxu0 %vm4697_vm0, %v4696_v1 }
 0xe48   : > { %v3600_v23 = vpop.f32.mrf.mxu1  ;;  %v3640_v58 = vpop.f32.mrf.mxu0 }
 0xe49   : > { %4519 = vmatpush3.msra.mxu1 %v3640_v58  ;;  %4524 = vmatpush3.msra.mxu0 %v3600_v23 }
 0xe4a   : > { %v4510_v59 = vpop.f32.mrf.mxu1  ;;  %v4516_v41 = vpop.f32.mrf.mxu0  ;;  %4521 = vmatmul.mubr.msk.f32.vlgmr.msra.gmra.mxu1 %vm1506_vm4, %v4998_v43  ;;  %4526 = vmatmul.mubr.msk.f32.vlgmr.msra.gmra.mxu0 %vm1506_vm4, %v5003_v44 }
 0xe4b   : > { %4528 = vmatprep.subr.mxu1 %v4696_v1  ;;  %4530 = vmatprep.mubr.msk.f32.mxu1 %vm4697_vm0, %v4696_v1 }
 0xe4c   : > { %v3603_v60 = vpop.f32.mrf.mxu1  ;;  %v3643_v7 = vpop.f32.mrf.mxu0 }
 0xe4e   : > { %v4511_v61 = vpop.f32.mrf.mxu1  ;;  %v4517_v63 = vpop.f32.mrf.mxu0 }
 0xf0a   : > { %v3712_v2 = vpop.f32.mrf.mxu1  ;;  %v3782_v22 = vpop.f32.mrf.mxu0 }
 0xf0b   : > { %v3783_v25 = vadd.f32 %v3782_v22, %v3712_v2 }
 0xf0c   : > { %v4522_v27 = vpop.f32.mrf.mxu1  ;;  %v4527_v28 = vpop.f32.mrf.mxu0 }
 0xf0d   : > { %v3786_v43 = vadd.f32 %v3783_v25, %v5025_v57 }
 0xf0f   : > { %4627 = vtanh.f32 %v3786_v43 }
 0xf1c   : > { %v4628_v44 = vpop.eup %4627 }
 0xf1d   : > { %4529 = vmatpush3.msra.mxu1 %v4628_v44 }
 0xf1e   : > { %4531 = vmatmul.mubr.msk.f32.vlgmr.msra.gmra.mxu1 %vm1506_vm4, %v5033_v0 }
 0xfde   : > { %v3854_v1 = vpop.f32.mrf.mxu1 }
 0xfdf   : > { %v3855_v49 = vadd.f32 %v3854_v1, %v5133_v26 }
 0xfe0   : > { %v4532_v4 = vpop.f32.mrf.mxu1 }
 0xfe1   : > { %v4061_v6 = vmul.f32 -1.442695, %v3855_v49 }
 0xfe3   : > { %4629 = vpow2.f32 %v4061_v6 }
 0xff0   : > { %v4630_v10 = vpop.eup %4629 }
 0xff1   : > { %v3861_v12 = vadd.f32 1.0, %v4630_v10 }
 0xff3   : > { %4631 = vrcp.f32 %v3861_v12 }
0x1000   : > { %v4632_v57 = vpop.eup %4631 }
0x1001   : > { %3864 = vst [vmem:[%s762_s21] sm:$0x1] %v4632_v57 }
0x1002   : > { %4647 = shalt.err (!%p4644_p3)
}
0x1003   : > { %s4648_s29 = scalar_lea.hbm %s5384_s6, 16  ;;  %s4652_s4 = scalar_lea.hbm %s5489_s30, 32 }
0x1004   : > { %p4649_p4 = scmp.ne.s32.totalorder %s5384_s6, %s4648_s29  ;;  %p4653_p9 = scmp.lt.s32.totalorder %s5384_s6, %s5489_s30 }
0x1005   : > { %p4654_p10 = scmp.lt.s32.totalorder %s4652_s4, %s4648_s29 }
0x1006   : > { %p4650_p7 = pnand %p4649_p4, %p4861_p5 }
0x1007   : > { %p4655_p11 = por %p4654_p10, %p4653_p9 }
0x1008   : > { %p4651_p8 = pneg %p4650_p7 }
0x100a   : > { %p4656_p12 = pnand %p4655_p11, %p4651_p8 }
0x100c   : > { %4659 = shalt.err (!%p4656_p12)
}
0x100d   : > { %4533 = dma.vmem_to_hbm [thread:$0]  (%p4861_p5), %s3879_s25, 16, %s5384_s6, %s3866_s0  }
0x100e PF: > { %s5490_s18 = sld [smem:[#allocation9_spill]] }
0x100f   : > { %s5491_s21 = sld [smem:[#allocation6_spill]] }
0x1014   : > { %p4539_p13 = scmp.ge.s32.totalorder %s5490_s18, 2 }
0x1015   : > { %s3890_s28 = sand.u32 1, %s5491_s21  }
0x1016   : > { %p4536_p0 = pnand %p4539_p13, %p4865_p6  ;;  %s3891_s7 = scalar_lea.sflag [#allocation4], %s3890_s28 }
0x1018   : > { %p4537_p1 = pneg %p4536_p0 }
0x101a   : > { %4677 = dma.done.wait (%p4537_p1), %s3891_s7, 16  }
0x101b   : > { %4679 = vsyncadd (%p4537_p1), %s3891_s7, 4294967280  ;;  %s5493_s1 = sld [smem:[#allocation11_spill]] }
0x101c   : > { %s5494_s24 = sld [smem:[#allocation7_spill]] }
0x101d   : > { %s5495_s25 = sld [smem:[#allocation8_spill]] }
0x101e   : > { %s5496_s5 = sld [smem:[#allocation12_spill]] }
0x1021   : > { %p35_p2 = scmp.ge.s32.totalorder %s5493_s1, 4  }
0x1023   :  { %37 = sbr.rel (!%p35_p2) target bundleno = 15 (0xf), region = 159 }
0x1028   :  { %3895 = vsyncpa [#allocation4], 1 }
0x1029   :  { %3897 = vsyncpa [#allocation4 + $0x1], 1 }

</bundles_post_ra>
